<compile_context>
chip_gen: v7x
topology: tpu7x:2x2x1
jax: 0.10.0
libtpu: 0.0.40
codegen_flags: <defaults>
</compile_context>

<pallas_src>
import math

import jax
import jax.numpy as jnp
from jax.experimental import pallas as pl
from jax.experimental.pallas import tpu as pltpu

LANE = 128      # lane width (last axis granularity)
SUBLANE = 8     # f32/bf16-friendly sublane granularity (second-to-last axis)


def _round_up(n, m):
    return ((n + m - 1) // m) * m


def _cdiv(a, b):
    return (a + b - 1) // b


def _parallel_tensorcores():
    """How many TensorCores a 'parallel' grid axis can shard across on this device.

    Returning 1 is always correct (just no megacore split); 2 on v4/v5p/v7x-style parts."""
    try:
        kind = jax.devices()[0].device_kind.lower()
    except Exception:
        return 1
    for tag in ("v4", "v5p", "v7"):
        if tag in kind:
            return 2
    return 1


# ----------------------------------------------------------------------------- kernel


def make_mlp_kernel(num_hidden):
    """Fused MLP: num_hidden x (MXU dot -> f32 * BN-scale + bias -> ReLU) then output dot + bias.

    Ref order: x_ref, (W_bf16, scale_f32, bias_f32) * num_hidden, W_out_bf16, b_out_f32, out_ref.
    Matmuls run on the MXU with f32 accumulation; BN scale/shift applied on the f32 accumulator.
    """

    def kernel(x_ref, *refs):
        out_ref = refs[-1]
        params = refs[:-1]

        h = x_ref[...]                                        # (tb, din_pad) bf16
        idx = 0
        for _ in range(num_hidden):
            w = params[idx][...]                              # (din_pad, dh_pad) bf16, un-scaled
            s = params[idx + 1][...]                          # (1, dh_pad) f32 BN scale
            b = params[idx + 2][...]                          # (1, dh_pad) f32 folded bias
            idx += 3
            acc = jnp.dot(h, w, preferred_element_type=jnp.float32) * s + b
            acc = jnp.maximum(acc, 0.0)                       # ReLU on the f32 accumulator
            h = acc.astype(jnp.bfloat16)                      # back to MXU input dtype

        wo = params[idx][...]                                 # (dh_pad, dout_pad) bf16
        bo = params[idx + 1][...]                             # (1, dout_pad) f32
        out = jnp.dot(h, wo, preferred_element_type=jnp.float32) + bo
        out_ref[...] = out.astype(out_ref.dtype)              # lane-dense bf16 store

    return kernel


# ----------------------------------------------------------------------------- wrapper


def mlp_forward(x, params, num_hidden, *, out_dim=2, max_block_batch=1024):
    """x: (B, input_dim) f32.  params: flat [(W, scale, bias)*H, W_out, b_out], padded/typed
    by `prepare_params`.  Returns (B, out_dim) f32 logits."""
    din_pad = params[0].shape[0]
    dout_pad = params[-1].shape[1]
    batch, in_dim = x.shape

    # Batch tiling: one tile per available TensorCore (1 on v5e/v6e -> single grid step,
    # 2 on megacore parts -> one balanced tile per core), capped so tiles stay tiny in VMEM.
    cores = _parallel_tensorcores()
    b_pad8 = _round_up(batch, SUBLANE)
    tb = min(_round_up(_cdiv(b_pad8, cores), SUBLANE), max_block_batch)
    b_pad = _round_up(b_pad8, tb)
    grid = (b_pad // tb,)

    # Fused pad+convert (no scatter-style .at[].set round trip). Padded rows/cols are zero,
    # and padded weight rows/cols are zero, so padding is numerically a no-op.
    xp = jnp.pad(x.astype(jnp.bfloat16), ((0, b_pad - batch), (0, din_pad - in_dim)))

    const2d = lambda i: (0, 0)                                # weights resident across the grid
    in_specs = [pl.BlockSpec((tb, din_pad), lambda i: (i, 0))]
    for p in params:
        in_specs.append(pl.BlockSpec(p.shape, const2d))
    out_specs = pl.BlockSpec((tb, dout_pad), lambda i: (i, 0))

    # Advisory cost estimate for the XLA scheduler.
    weight_shapes = [params[3 * l].shape for l in range(num_hidden)] + [params[-2].shape]
    flops = 2 * b_pad * sum(s[0] * s[1] for s in weight_shapes)
    param_bytes = sum(int(p.size) * p.dtype.itemsize for p in params)
    bytes_accessed = xp.size * xp.dtype.itemsize + param_bytes + b_pad * dout_pad * 2

    # Explicit VMEM budget: double-buffered x/out tiles + resident params, with headroom.
    tile_bytes = tb * (din_pad + dout_pad) * 2                # bf16 x tile + bf16 out tile
    vmem_limit = max(8 * 1024 * 1024, 4 * (2 * tile_bytes + param_bytes))
    vmem_limit = min(vmem_limit, 64 * 1024 * 1024)

    out = pl.pallas_call(
        make_mlp_kernel(num_hidden),
        out_shape=jax.ShapeDtypeStruct((b_pad, dout_pad), jnp.bfloat16),
        grid=grid,
        in_specs=in_specs,
        out_specs=out_specs,
        compiler_params=pltpu.CompilerParams(
            dimension_semantics=("parallel",),                # batch axis -> both TCs on megacore
            vmem_limit_bytes=int(vmem_limit),
        ),
        cost_estimate=pl.CostEstimate(
            flops=flops, transcendentals=0, bytes_accessed=bytes_accessed
        ),
    )(xp, *params)

    return out[:batch, :out_dim].astype(jnp.float32)


# ----------------------------------------------------------------------------- params


def init_raw_params(key, input_dim, embed_dims, out_dim=2):
    """PyTorch-style init: per hidden layer (W, b, gamma, beta, running_mean, running_var),
    plus the output (W, b).  Weights are (in_features, out_features), transposed vs. torch."""
    layers = []
    d = input_dim
    keys = jax.random.split(key, len(embed_dims) + 1)
    for li, h in enumerate(embed_dims):
        k = jax.random.split(keys[li], 6)
        bound = 1.0 / math.sqrt(d)
        W = jax.random.uniform(k[0], (d, h), jnp.float32, -bound, bound)
        b = jax.random.uniform(k[1], (h,), jnp.float32, -bound, bound)
        gamma = 1.0 + 0.1 * jax.random.normal(k[2], (h,), jnp.float32)
        beta = 0.1 * jax.random.normal(k[3], (h,), jnp.float32)
        rmean = 0.1 * jax.random.normal(k[4], (h,), jnp.float32)
        rvar = 1.0 + 0.1 * jax.random.uniform(k[5], (h,), jnp.float32)
        layers.append(("hidden", W, b, gamma, beta, rmean, rvar))
        d = h
    k = jax.random.split(keys[-1], 2)
    bound = 1.0 / math.sqrt(d)
    Wo = jax.random.uniform(k[0], (d, out_dim), jnp.float32, -bound, bound)
    bo = jax.random.uniform(k[1], (out_dim,), jnp.float32, -bound, bound)
    layers.append(("out", Wo, bo))
    return layers


def prepare_params(raw, eps=1e-5):
    """Per hidden layer: keep W (bf16, un-scaled), BN scale and folded bias as f32 row vectors
    (applied to the f32 accumulator inside the kernel).  Zero-pad feature axes to 128 lanes."""
    params = []
    for layer in raw[:-1]:
        _, W, b, gamma, beta, rmean, rvar = layer
        scale = gamma / jnp.sqrt(rvar + eps)
        shift = beta - rmean * scale
        bias = b * scale + shift
        din, dout = W.shape
        dinp, doutp = _round_up(din, LANE), _round_up(dout, LANE)
        Wp = jnp.pad(W, ((0, dinp - din), (0, doutp - dout))).astype(jnp.bfloat16)
        sp = jnp.pad(scale, (0, doutp - dout)).reshape(1, doutp).astype(jnp.float32)
        bp = jnp.pad(bias, (0, doutp - dout)).reshape(1, doutp).astype(jnp.float32)
        params += [Wp, sp, bp]
    _, Wo, bo = raw[-1]
    din, dout = Wo.shape
    dinp, doutp = _round_up(din, LANE), _round_up(dout, LANE)
    params += [
        jnp.pad(Wo, ((0, dinp - din), (0, doutp - dout))).astype(jnp.bfloat16),
        jnp.pad(bo, (0, doutp - dout)).reshape(1, doutp).astype(jnp.float32),
    ]
    return params


# ----------------------------------------------------------------------------- references


def mlp_reference_f32(x, raw, eps=1e-5):
    """Original module math (eval mode: BN uses running stats, dropout identity), full f32."""
    h = x
    for layer in raw[:-1]:
        _, W, b, gamma, beta, rmean, rvar = layer
        h = h @ W + b
        h = (h - rmean) / jnp.sqrt(rvar + eps) * gamma + beta
        h = jnp.maximum(h, 0.0)
    _, Wo, bo = raw[-1]
    return h @ Wo + bo


def mlp_reference_kernel_math(x, params, num_hidden, out_dim=2):
    """Pure-JAX mirror of the kernel math (bf16 matmul operands, f32 accumulate, f32 BN
    scale/bias on the accumulator, bf16 output store)."""
    din_pad = params[0].shape[0]
    h = jnp.pad(x.astype(jnp.bfloat16), ((0, 0), (0, din_pad - x.shape[1])))
    idx = 0
    for _ in range(num_hidden):
        w, s, b = params[idx], params[idx + 1], params[idx + 2]
        idx += 3
        acc = jnp.dot(h, w, preferred_element_type=jnp.float32) * s + b
        h = jnp.maximum(acc, 0.0).astype(jnp.bfloat16)
    out = jnp.dot(h, params[idx], preferred_element_type=jnp.float32) + params[idx + 1]
    out = out.astype(jnp.bfloat16).astype(jnp.float32)
    return out[:, :out_dim]


# ----------------------------------------------------------------------------- main


if __name__ == "__main__":
    # M3FENDModel: self.classifier = MLP(64 * 5, mlp_dims, dropout); mlp_dims = [384] in M3FEND.
    batch = 200            # not a multiple of 128 -> exercises batch padding / tiling
    input_dim = 64 * 5     # 320: gated mix over the 5x64 CNN-expert features
    embed_dims = (384,)
    num_hidden = len(embed_dims)

    key = jax.random.PRNGKey(0)
    kx, kp = jax.random.split(key)
    x = jax.random.normal(kx, (batch, input_dim), jnp.float32)

    raw = init_raw_params(kp, input_dim, embed_dims)
    params = prepare_params(raw)

    fwd = jax.jit(lambda xx: mlp_forward(xx, params, num_hidden))
    out = jax.block_until_ready(fwd(x))
    assert out.shape == (batch, 2), out.shape

    # Exact-math check: same operand rounding / accumulation scheme as the kernel.
    ref_k = mlp_reference_kernel_math(x, params, num_hidden)
    assert jnp.allclose(out, ref_k, atol=1e-2, rtol=1e-2), float(jnp.max(jnp.abs(out - ref_k)))

    # Semantic check against the original (unfolded, f32) module math, eval mode.
    ref_f = mlp_reference_f32(x, raw)
    assert jnp.allclose(out, ref_f, atol=5e-2, rtol=5e-2), float(jnp.max(jnp.abs(out - ref_f)))

    print("KERNEL_OK")
</pallas_src>

<mosaic_0001>
module attributes {stable_mosaic.version = 11 : i64} {
  func.func @kernel(%arg0: i32, %arg1: memref<200x384xbf16, #tpu.memory_space<vmem>>, %arg2: memref<384x384xbf16, #tpu.memory_space<vmem>>, %arg3: memref<1x384xf32, #tpu.memory_space<vmem>>, %arg4: memref<1x384xf32, #tpu.memory_space<vmem>>, %arg5: memref<384x128xbf16, #tpu.memory_space<vmem>>, %arg6: memref<1x128xf32, #tpu.memory_space<vmem>>, %arg7: memref<200x128xbf16, #tpu.memory_space<vmem>>) attributes {dimension_semantics = [#tpu.dimension_semantics<parallel>], iteration_bounds = array<i64: 1>, scalar_prefetch = 0 : i64, scratch_operands = 0 : i64, tpu.core_type = #tpu.core_type<tc>, window_params = [{transform_indices = @transform_0, window_bounds = array<i64: 200, 384>}, {pipeline_mode = #tpu.pipeline_mode<synchronous>, transform_indices = @transform_1, window_bounds = array<i64: 384, 384>}, {pipeline_mode = #tpu.pipeline_mode<synchronous>, transform_indices = @transform_2, window_bounds = array<i64: 1, 384>}, {pipeline_mode = #tpu.pipeline_mode<synchronous>, transform_indices = @transform_3, window_bounds = array<i64: 1, 384>}, {pipeline_mode = #tpu.pipeline_mode<synchronous>, transform_indices = @transform_4, window_bounds = array<i64: 384, 128>}, {pipeline_mode = #tpu.pipeline_mode<synchronous>, transform_indices = @transform_5, window_bounds = array<i64: 1, 128>}, {transform_indices = @transform_6, window_bounds = array<i64: 200, 128>}]} {
    %c0 = arith.constant 0 : index
    %c0_0 = arith.constant 0 : index
    %0 = vector.load %arg1[%c0, %c0_0] : memref<200x384xbf16, #tpu.memory_space<vmem>>, vector<200x384xbf16>
    %c0_1 = arith.constant 0 : index
    %c0_2 = arith.constant 0 : index
    %1 = vector.load %arg2[%c0_1, %c0_2] : memref<384x384xbf16, #tpu.memory_space<vmem>>, vector<384x384xbf16>
    %c0_3 = arith.constant 0 : index
    %c0_4 = arith.constant 0 : index
    %2 = vector.load %arg3[%c0_3, %c0_4] : memref<1x384xf32, #tpu.memory_space<vmem>>, vector<1x384xf32>
    %c0_5 = arith.constant 0 : index
    %c0_6 = arith.constant 0 : index
    %3 = vector.load %arg4[%c0_5, %c0_6] : memref<1x384xf32, #tpu.memory_space<vmem>>, vector<1x384xf32>
    %cst = arith.constant dense<0.000000e+00> : vector<200x384xf32>
    %4 = tpu.matmul %0, %1, %cst {dimension_numbers = #tpu.dot_dimension_numbers<[1], [0], [0], [1], [0, 0, 1, 1], [], []>} : vector<200x384xbf16>, vector<384x384xbf16>, vector<200x384xf32> -> vector<200x384xf32>
    %5 = vector.broadcast %2 : vector<1x384xf32> to vector<200x384xf32>
    %6 = arith.mulf %4, %5 : vector<200x384xf32>
    %7 = vector.broadcast %3 : vector<1x384xf32> to vector<200x384xf32>
    %8 = arith.addf %6, %7 : vector<200x384xf32>
    %cst_7 = arith.constant 0.000000e+00 : f32
    %9 = vector.broadcast %cst_7 : f32 to vector<200x384xf32>
    %10 = arith.maximumf %8, %9 : vector<200x384xf32>
    %11 = arith.truncf %10 : vector<200x384xf32> to vector<200x384xbf16>
    %c0_8 = arith.constant 0 : index
    %c0_9 = arith.constant 0 : index
    %12 = vector.load %arg5[%c0_8, %c0_9] : memref<384x128xbf16, #tpu.memory_space<vmem>>, vector<384x128xbf16>
    %c0_10 = arith.constant 0 : index
    %c0_11 = arith.constant 0 : index
    %13 = vector.load %arg6[%c0_10, %c0_11] : memref<1x128xf32, #tpu.memory_space<vmem>>, vector<1x128xf32>
    %cst_12 = arith.constant dense<0.000000e+00> : vector<200x128xf32>
    %14 = tpu.matmul %11, %12, %cst_12 {dimension_numbers = #tpu.dot_dimension_numbers<[1], [0], [0], [1], [0, 0, 1, 1], [], []>} : vector<200x384xbf16>, vector<384x128xbf16>, vector<200x128xf32> -> vector<200x128xf32>
    %15 = vector.broadcast %13 : vector<1x128xf32> to vector<200x128xf32>
    %16 = arith.addf %14, %15 : vector<200x128xf32>
    %17 = arith.truncf %16 : vector<200x128xf32> to vector<200x128xbf16>
    %c0_13 = arith.constant 0 : index
    %c0_14 = arith.constant 0 : index
    %18 = vector.load %arg7[%c0_13, %c0_14] : memref<200x128xbf16, #tpu.memory_space<vmem>>, vector<200x128xbf16>
    tpu.vector_store %arg7[%c0_13, %c0_14], %17 {strides = array<i32>} : memref<200x128xbf16, #tpu.memory_space<vmem>>, vector<200x128xbf16>,
    return
  }
  func.func @transform_0(%arg0: i32) -> (i32, i32) {
    %c0_i32 = arith.constant 0 : i32
    %c0_i32_0 = arith.constant 0 : i32
    return %arg0, %c0_i32 : i32, i32
  }
  func.func @transform_1(%arg0: i32) -> (i32, i32) {
    %c0_i32 = arith.constant 0 : i32
    %c0_i32_0 = arith.constant 0 : i32
    %c0_i32_1 = arith.constant 0 : i32
    return %c0_i32, %c0_i32_0 : i32, i32
  }
  func.func @transform_2(%arg0: i32) -> (i32, i32) {
    %c0_i32 = arith.constant 0 : i32
    %c0_i32_0 = arith.constant 0 : i32
    %c0_i32_1 = arith.constant 0 : i32
    return %c0_i32, %c0_i32_0 : i32, i32
  }
  func.func @transform_3(%arg0: i32) -> (i32, i32) {
    %c0_i32 = arith.constant 0 : i32
    %c0_i32_0 = arith.constant 0 : i32
    %c0_i32_1 = arith.constant 0 : i32
    return %c0_i32, %c0_i32_0 : i32, i32
  }
  func.func @transform_4(%arg0: i32) -> (i32, i32) {
    %c0_i32 = arith.constant 0 : i32
    %c0_i32_0 = arith.constant 0 : i32
    %c0_i32_1 = arith.constant 0 : i32
    return %c0_i32, %c0_i32_0 : i32, i32
  }
  func.func @transform_5(%arg0: i32) -> (i32, i32) {
    %c0_i32 = arith.constant 0 : i32
    %c0_i32_0 = arith.constant 0 : i32
    %c0_i32_1 = arith.constant 0 : i32
    return %c0_i32, %c0_i32_0 : i32, i32
  }
  func.func @transform_6(%arg0: i32) -> (i32, i32) {
    %c0_i32 = arith.constant 0 : i32
    %c0_i32_0 = arith.constant 0 : i32
    return %arg0, %c0_i32 : i32, i32
  }
}

</mosaic_0001>

<bundles_post_ra>
// kernel: _lambda_.1
= control target key start
LH: loop header
LB: loop body
LE: loop exit
PB: predicated region body
PF: predicated region fallthrough
CT: control target
= control target key end

     0   :  { %v3115_v38 = vmov 0.0   ;;  %vm3116_vm0 = vmmov 0   ;;  %s4077_s1 = inlined_call_operand.vmem [shape: bf16[384,384], index: 1, kind: input, shape index: {}]   ;;  %s4078_s0 = inlined_call_operand.vmem [shape: bf16[200,384], index: 0, kind: input, shape index: {}]   ;;  %s4079_s4 = inlined_call_operand.vmem [shape: bf16[384,128], index: 4, kind: input, shape index: {}]   ;;  %s4080_s2 = inlined_call_operand.vmem [shape: f32[1,384], index: 2, kind: input, shape index: {}]   ;;  %s4081_s3 = inlined_call_operand.vmem [shape: f32[1,384], index: 3, kind: input, shape index: {}]   ;;  %s4082_s5 = inlined_call_operand.vmem [shape: f32[1,128], index: 5, kind: input, shape index: {}]   ;;  %s4083_s6 = inlined_call_operand.vmem [shape: bf16[200,128], index: 6, kind: output, shape index: {}]  }
   0x1   :  { %v2944_v0 = vld [vmem:[%s4077_s1 + $0x4] ss:$12 sps:$4 sm:$0xff]   ;;  %v2946_v1 = vld [vmem:[%s4077_s1 + $0xc8] ss:$12 sps:$4 sm:$0xff]   ;;  %v2947_v2 = vld [vmem:[%s4077_s1] ss:$12 sps:$4 sm:$0xff]  }
   0x2   :  { %759 = vmatprep.subr.bf16.mxu0 %v2944_v0  ;;  %2507 = vmatprep.subr.bf16.mxu1 %v2946_v1  ;;  %v2948_v3 = vld [vmem:[%s4077_s1 + $0x8] ss:$12 sps:$4 sm:$0xff]   ;;  %v2951_v5 = vld [vmem:[%s4077_s1 + $0xe0] ss:$12 sps:$4 sm:$0xff]   ;;  %v2952_v6 = vld [vmem:[%s4077_s1 + $0x18] ss:$12 sps:$4 sm:$0xff]  }
   0x3   :  { %760 = vmatpush1.bf16.msra.mxu0 %v2947_v2  ;;  %v2949_v4 = vld [vmem:[%s4077_s1 + $0x1c] ss:$12 sps:$4 sm:$0xff]   ;;  %2508 = vmatpush3.bf16.msra.mxu1 %v2948_v3  ;;  %v2953_v7 = vld [vmem:[%s4077_s1 + $0x20] ss:$12 sps:$4 sm:$0xff]   ;;  %v2956_v9 = vld [vmem:[%s4077_s1 + $0xf8] ss:$12 sps:$4 sm:$0xff]  }
   0x4   :  { %761 = vmatprep.subr.bf16.mxu0 %v2949_v4  ;;  %2509 = vmatprep.subr.bf16.mxu1 %v2951_v5  ;;  %v2954_v8 = vld [vmem:[%s4077_s1 + $0x34] ss:$12 sps:$4 sm:$0xff]   ;;  %v2957_v10 = vld [vmem:[%s4077_s1 + $0x30] ss:$12 sps:$4 sm:$0xff]   ;;  %v2958_v11 = vld [vmem:[%s4077_s1 + $0x38] ss:$12 sps:$4 sm:$0xff]  }
   0x5   :  { %v2959_v12 = vld [vmem:[%s4077_s1 + $0x4c] ss:$12 sps:$4 sm:$0xff]   ;;  %v2961_v13 = vld [vmem:[%s4077_s1 + $0x110] ss:$12 sps:$4 sm:$0xff]   ;;  %v2962_v14 = vld [vmem:[%s4077_s1 + $0x48] ss:$12 sps:$4 sm:$0xff]  }
   0x6   :  { %v2963_v15 = vld [vmem:[%s4077_s1 + $0x50] ss:$12 sps:$4 sm:$0xff]   ;;  %v2966_v17 = vld [vmem:[%s4077_s1 + $0x128] ss:$12 sps:$4 sm:$0xff]   ;;  %v2967_v18 = vld [vmem:[%s4077_s1 + $0x60] ss:$12 sps:$4 sm:$0xff]  }
   0x7   :  { %762 = vmatpush1.bf16.msra.mxu0 %v2952_v6  ;;  %2510 = vmatpush3.bf16.msra.mxu1 %v2953_v7  ;;  %v2964_v16 = vld [vmem:[%s4077_s1 + $0x64] ss:$12 sps:$4 sm:$0xff]   ;;  %v2968_v19 = vld [vmem:[%s4077_s1 + $0x68] ss:$12 sps:$4 sm:$0xff]   ;;  %v2971_v21 = vld [vmem:[%s4077_s1 + $0x140] ss:$12 sps:$4 sm:$0xff]  }
   0x8   :  { %763 = vmatprep.subr.bf16.mxu0 %v2954_v8  ;;  %2511 = vmatprep.subr.bf16.mxu1 %v2956_v9  ;;  %v2969_v20 = vld [vmem:[%s4077_s1 + $0x7c] ss:$12 sps:$4 sm:$0xff]   ;;  %v2972_v22 = vld [vmem:[%s4077_s1 + $0x78] ss:$12 sps:$4 sm:$0xff]   ;;  %v2973_v23 = vld [vmem:[%s4077_s1 + $0x80] ss:$12 sps:$4 sm:$0xff]  }
   0x9   :  { %v2974_v24 = vld [vmem:[%s4077_s1 + $0x94] ss:$12 sps:$4 sm:$0xff]   ;;  %v2976_v25 = vld [vmem:[%s4077_s1 + $0x158] ss:$12 sps:$4 sm:$0xff]   ;;  %v2977_v26 = vld [vmem:[%s4077_s1 + $0x90] ss:$12 sps:$4 sm:$0xff]  }
   0xa   :  { %v2978_v27 = vld [vmem:[%s4077_s1 + $0x98] ss:$12 sps:$4 sm:$0xff]   ;;  %v2981_v29 = vld [vmem:[%s4077_s1 + $0x170] ss:$12 sps:$4 sm:$0xff]   ;;  %v2982_v30 = vld [vmem:[%s4077_s1 + $0xa8] ss:$12 sps:$4 sm:$0xff]  }
   0xb   :  { %764 = vmatpush1.bf16.msra.mxu0 %v2957_v10  ;;  %2512 = vmatpush3.bf16.msra.mxu1 %v2958_v11  ;;  %v2979_v28 = vld [vmem:[%s4077_s1 + $0xac] ss:$12 sps:$4 sm:$0xff]   ;;  %v2986_v31 = vld [vmem:[%s4078_s0 + $0x4] ss:$12 sps:$4 sm:$0xff]   ;;  %v2990_v36 = vld [vmem:[%s4077_s1 + $0xdc] ss:$12 sps:$4 sm:$0xff]  }
   0xc   :  { %765 = vmatprep.subr.bf16.mxu0 %v2959_v12  ;;  %2513 = vmatprep.subr.bf16.mxu1 %v2961_v13  ;;  %v2983_v32 = vld [vmem:[%s4077_s1 + $0xb0] ss:$12 sps:$4 sm:$0xff]   ;;  %v3258_v34 = vld [vmem:[%s4078_s0] ss:$12 sps:$4 sm:$0xff]   ;;  %v2992_v39 = vld [vmem:[%s4077_s1 + $0xd8] ss:$12 sps:$4 sm:$0xff]  }
   0xd   :  { %v2987_v33 = vld [vmem:[%s4077_s1 + $0xc4] ss:$12 sps:$4 sm:$0xff]   ;;  %1113 = vmatprep.mubr.bf16.mxu1 %v2986_v31  ;;  %791 = vmatprep.mubr.bf16.mxu0 %v2986_v31  ;;  %v2989_v35 = vld [vmem:[%s4077_s1 + $0xc0] ss:$12 sps:$4 sm:$0xff]   ;;  %v3269_v37 = vld [vmem:[%s4078_s0 + $0x1c] ss:$12 sps:$4 sm:$0xff]  }
   0xe   :  { %v2995_v40 = vld [vmem:[%s4077_s1 + $0xf4] ss:$12 sps:$4 sm:$0xff]   ;;  %v3283_v41 = vld [vmem:[%s4078_s0 + $0x18] ss:$12 sps:$4 sm:$0xff]   ;;  %v2998_v42 = vld [vmem:[%s4077_s1 + $0xf0] ss:$12 sps:$4 sm:$0xff]  }
   0xf   :  { %766 = vmatpush1.bf16.msra.mxu0 %v2962_v14  ;;  %2514 = vmatpush3.bf16.msra.mxu1 %v2963_v15  ;;  %v2999_v43 = vld [vmem:[%s4077_s1 + $0x10c] ss:$12 sps:$4 sm:$0xff]   ;;  %v3294_v44 = vld [vmem:[%s4078_s0 + $0x34] ss:$12 sps:$4 sm:$0xff]   ;;  %v3004_v46 = vld [vmem:[%s4077_s1 + $0x124] ss:$12 sps:$4 sm:$0xff]  }
  0x10   :  { %767 = vmatprep.subr.bf16.mxu0 %v2964_v16  ;;  %2515 = vmatprep.subr.bf16.mxu1 %v2966_v17  ;;  %v3001_v45 = vld [vmem:[%s4077_s1 + $0x108] ss:$12 sps:$4 sm:$0xff]   ;;  %v3307_v47 = vld [vmem:[%s4078_s0 + $0x30] ss:$12 sps:$4 sm:$0xff]   ;;  %v3007_v48 = vld [vmem:[%s4077_s1 + $0x120] ss:$12 sps:$4 sm:$0xff]  }
  0x11   :  { %v3008_v49 = vld [vmem:[%s4077_s1 + $0x13c] ss:$12 sps:$4 sm:$0xff]   ;;  %v3318_v50 = vld [vmem:[%s4078_s0 + $0x4c] ss:$12 sps:$4 sm:$0xff]   ;;  %v3013_v53 = vld [vmem:[%s4077_s1 + $0x154] ss:$12 sps:$4 sm:$0xff]  }
  0x12   :  { %v3035_v51 = vld [vmem:[%s4077_s1 + $0x188] ss:$12 sps:$4 sm:$0xff]   ;;  %v3010_v52 = vld [vmem:[%s4077_s1 + $0x138] ss:$12 sps:$4 sm:$0xff]   ;;  %v3042_v54 = vld [vmem:[%s4077_s1 + $0x1a0] ss:$12 sps:$4 sm:$0xff]  }
  0x13   :  { %768 = vmatpush1.bf16.msra.mxu0 %v2967_v18  ;;  %2516 = vmatpush3.bf16.msra.mxu1 %v2968_v19  ;;  %v3338_v55 = vld [vmem:[%s4078_s0 + $0x48] ss:$12 sps:$4 sm:$0xff]   ;;  %v3016_v56 = vld [vmem:[%s4077_s1 + $0x150] ss:$12 sps:$4 sm:$0xff]   ;;  %v3017_v57 = vld [vmem:[%s4077_s1 + $0x16c] ss:$12 sps:$4 sm:$0xff]  }
  0x14   :  { %769 = vmatprep.subr.bf16.mxu0 %v2969_v20  ;;  %2517 = vmatprep.subr.bf16.mxu1 %v2971_v21  ;;  %v3349_v58 = vld [vmem:[%s4078_s0 + $0x64] ss:$12 sps:$4 sm:$0xff]   ;;  %v3019_v60 = vld [vmem:[%s4077_s1 + $0x168] ss:$12 sps:$4 sm:$0xff]   ;;  %v3022_v63 = vld [vmem:[%s4077_s1 + $0x180] ss:$12 sps:$4 sm:$0xff]  }
  0x15   :  { %v3052_v59 = vld [vmem:[%s4077_s1 + $0x1b8] ss:$12 sps:$4 sm:$0xff]   ;;  %v3059_v62 = vld [vmem:[%s4077_s1 + $0x1d0] ss:$12 sps:$4 sm:$0xff]   ;;  %v3372_v0 = vld [vmem:[%s4078_s0 + $0x60] ss:$12 sps:$4 sm:$0xff]  }
  0x16   :  { %v3024_v61 = vld [vmem:[%s4077_s1 + $0x184] ss:$12 sps:$4 sm:$0xff]   ;;  %v3378_v1 = vld [vmem:[%s4078_s0 + $0x7c] ss:$12 sps:$4 sm:$0xff]   ;;  %v3041_v5 = vld [vmem:[%s4077_s1 + $0x1b4] ss:$12 sps:$4 sm:$0xff]  }
  0x17   :  { %770 = vmatpush1.bf16.msra.mxu0 %v2972_v22  ;;  %2518 = vmatpush3.bf16.msra.mxu1 %v2973_v23  ;;  %v3031_v2 = vld [vmem:[%s4077_s1 + $0x19c] ss:$12 sps:$4 sm:$0xff]   ;;  %v3029_v4 = vld [vmem:[%s4077_s1 + $0x198] ss:$12 sps:$4 sm:$0xff]   ;;  %v3064_v6 = vld [vmem:[%s4077_s1 + $0x200] ss:$12 sps:$4 sm:$0xff]  }
  0x18   :  { %771 = vmatprep.subr.bf16.mxu0 %v2974_v24  ;;  %2519 = vmatprep.subr.bf16.mxu1 %v2976_v25  ;;  %v3063_v3 = vld [vmem:[%s4077_s1 + $0x1e8] ss:$12 sps:$4 sm:$0xff]   ;;  %v3028_v7 = vld [vmem:[%s4078_s0 + $0x78] ss:$12 sps:$4 sm:$0xff]   ;;  %v3039_v9 = vld [vmem:[%s4077_s1 + $0x1b0] ss:$12 sps:$4 sm:$0xff]  }
  0x19   :  { %v3032_v8 = vld [vmem:[%s4078_s0 + $0x94] ss:$12 sps:$4 sm:$0xff]   ;;  %v3048_v10 = vld [vmem:[%s4077_s1 + $0x1cc] ss:$12 sps:$4 sm:$0xff]   ;;  %v3058_v13 = vld [vmem:[%s4077_s1 + $0x1e4] ss:$12 sps:$4 sm:$0xff]  }
  0x1a   :  { %v3070_v11 = vld [vmem:[%s4077_s1 + $0x218] ss:$12 sps:$4 sm:$0xff]   ;;  %v3046_v12 = vld [vmem:[%s4077_s1 + $0x1c8] ss:$12 sps:$4 sm:$0xff]   ;;  %v3071_v14 = vld [vmem:[%s4077_s1 + $0x230] ss:$12 sps:$4 sm:$0xff]  }
  0x1b   :  { %772 = vmatpush1.bf16.msra.mxu0 %v2977_v26  ;;  %2520 = vmatpush3.bf16.msra.mxu1 %v2978_v27  ;;  %v3034_v15 = vld [vmem:[%s4078_s0 + $0x90] ss:$12 sps:$4 sm:$0xff]   ;;  %v3036_v16 = vld [vmem:[%s4078_s0 + $0xac] ss:$12 sps:$4 sm:$0xff]   ;;  %v3075_v20 = vld [vmem:[%s4077_s1 + $0x214] ss:$12 sps:$4 sm:$0xff]  }
  0x1c   :  { %773 = vmatprep.subr.bf16.mxu0 %v2979_v28  ;;  %2521 = vmatprep.subr.bf16.mxu1 %v2981_v29  ;;  %v3056_v17 = vld [vmem:[%s4077_s1 + $0x1e0] ss:$12 sps:$4 sm:$0xff]   ;;  %v3069_v18 = vld [vmem:[%s4077_s1 + $0x1fc] ss:$12 sps:$4 sm:$0xff]   ;;  %v3067_v19 = vld [vmem:[%s4077_s1 + $0x1f8] ss:$12 sps:$4 sm:$0xff]  }
  0x1d   :  { %v3038_v21 = vld [vmem:[%s4078_s0 + $0xa8] ss:$12 sps:$4 sm:$0xff]   ;;  %v3043_v22 = vld [vmem:[%s4078_s0 + $0xc4] ss:$12 sps:$4 sm:$0xff]   ;;  %v3080_v24 = vld [vmem:[%s4077_s1 + $0x22c] ss:$12 sps:$4 sm:$0xff]  }
  0x1e   :  { %v3073_v23 = vld [vmem:[%s4077_s1 + $0x210] ss:$12 sps:$4 sm:$0xff]   ;;  %v3078_v25 = vld [vmem:[%s4077_s1 + $0x228] ss:$12 sps:$4 sm:$0xff]   ;;  %v3045_v26 = vld [vmem:[%s4078_s0 + $0xc0] ss:$12 sps:$4 sm:$0xff]  }
  0x1f   :  { %774 = vmatpush1.bf16.msra.mxu0 %v2982_v30  ;;  %2522 = vmatpush3.bf16.msra.mxu1 %v2983_v32  ;;  %v3049_v27 = vld [vmem:[%s4078_s0 + $0xdc] ss:$12 sps:$4 sm:$0xff]   ;;  %v3051_v28 = vld [vmem:[%s4078_s0 + $0xd8] ss:$12 sps:$4 sm:$0xff]   ;;  %v3053_v29 = vld [vmem:[%s4078_s0 + $0xf4] ss:$12 sps:$4 sm:$0xff]  }
  0x20   :  { %775 = vmatprep.subr.bf16.mxu0 %v2987_v33  ;;  %2737 = vmatprep.subr.bf16.mxu1 %v3115_v38  ;;  %v3055_v30 = vld [vmem:[%s4078_s0 + $0xf0] ss:$12 sps:$4 sm:$0xff]   ;;  %v3060_v31 = vld [vmem:[%s4078_s0 + $0x10c] ss:$12 sps:$4 sm:$0xff]   ;;  %v72_v32 = vld [vmem:[%s4078_s0 + $0x120] sm:$0xff] }
  0x21   :  { %v3062_v33 = vld [vmem:[%s4078_s0 + $0x108] ss:$12 sps:$4 sm:$0xff]  }
  0x22   :  { %1114 = vmatmul.mubr.bf16.vlgmr.msra.gmra.mrb[0].mxu1 %v3258_v34 }
  0x23   :  { %776 = vmatpush1.bf16.msra.mxu0 %v2989_v35  ;;  %1121 = vmatprep.mubr.bf16.mxu1 %v3269_v37  ;;  %v2286_v35 = vcombine.low %v72_v32, %v72_v32 }
  0x24   :  { %777 = vmatprep.subr.bf16.mxu0 %v2990_v36  ;;  %2738 = vmatpush3.bf16.msra.mxu1 %v3035_v51  ;;  %v3072_v36 = vld [vmem:[%s4078_s0 + $0x8] ss:$12 sps:$4 sm:$0xff]   ;;  %v3098_v51 = vld [vmem:[%s4079_s4 + $0x58] sm:$0xff]  }
  0x25   :  { %2739 = vmatprep.subr.bf16.mxu1 %v3115_v38 }
  0x27   :  { %778 = vmatpush1.bf16.msra.mxu0 %v2992_v39  ;;  %v3092_v39 = vld [vmem:[%s4079_s4] sm:$0xff]  }
  0x28   :  { %779 = vmatprep.subr.bf16.mxu0 %v2995_v40  ;;  %2740 = vmatpush3.bf16.msra.mxu1 %v3042_v54  ;;  %v3076_v40 = vld [vmem:[%s4078_s0 + $0x20] ss:$12 sps:$4 sm:$0xff]   ;;  %v3085_v54 = vld [vmem:[%s4078_s0 + $0xb0] ss:$12 sps:$4 sm:$0xff]  }
  0x29   :  { %2741 = vmatprep.subr.bf16.mxu1 %v3115_v38 }
  0x2a   :  { %1122 = vmatmul.mubr.bf16.gmra.mrb[4].mxu1 %v3283_v41 }
  0x2b   :  { %780 = vmatpush1.bf16.msra.mxu0 %v2998_v42  ;;  %1129 = vmatprep.mubr.bf16.mxu1 %v3294_v44  ;;  %v3094_v42 = vld [vmem:[%s4079_s4 + $0x8] sm:$0xff]  }
  0x2c   :  { %781 = vmatprep.subr.bf16.mxu0 %v2999_v43  ;;  %2742 = vmatpush3.bf16.msra.mxu1 %v3052_v59  ;;  %v3077_v43 = vld [vmem:[%s4078_s0 + $0x38] ss:$12 sps:$4 sm:$0xff]  }
  0x2d   :  { %2743 = vmatprep.subr.bf16.mxu1 %v3115_v38  ;;  %v3102_v59 = vld [vmem:[%s4079_s4 + $0x60] sm:$0xff]  }
  0x2f   :  { %782 = vmatpush1.bf16.msra.mxu0 %v3001_v45  ;;  %v3096_v45 = vld [vmem:[%s4079_s4 + $0x10] sm:$0xff]  }
  0x30   :  { %783 = vmatprep.subr.bf16.mxu0 %v3004_v46  ;;  %2744 = vmatpush3.bf16.msra.mxu1 %v3059_v62  ;;  %v3081_v46 = vld [vmem:[%s4078_s0 + $0x50] ss:$12 sps:$4 sm:$0xff]   ;;  %v3088_v62 = vld [vmem:[%s4078_s0 + $0xf8] ss:$12 sps:$4 sm:$0xff]  }
  0x31   :  { %2745 = vmatprep.subr.bf16.mxu1 %v3115_v38 }
  0x32   :  { %1130 = vmatmul.mubr.bf16.gmra.mrb[8].mxu1 %v3307_v47 }
  0x33   :  { %784 = vmatpush1.bf16.msra.mxu0 %v3007_v48  ;;  %1137 = vmatprep.mubr.bf16.mxu1 %v3318_v50  ;;  %v3082_v48 = vld [vmem:[%s4078_s0 + $0x68] ss:$12 sps:$4 sm:$0xff]  }
  0x34   :  { %785 = vmatprep.subr.bf16.mxu0 %v3008_v49  ;;  %2746 = vmatpush3.bf16.msra.mxu1 %v3063_v3  ;;  %v3540_v49 = vld [vmem:[%s4079_s4 + $0x80] sm:$0xff]   ;;  %v3646_v3 = vld [vmem:[%s4079_s4 + $0xb8] sm:$0xff]  }
  0x35   :  { %2747 = vmatprep.subr.bf16.mxu1 %v3115_v38 }
  0x37   :  { %786 = vmatpush1.bf16.msra.mxu0 %v3010_v52  ;;  %v3084_v52 = vld [vmem:[%s4078_s0 + $0x98] ss:$12 sps:$4 sm:$0xff]  }
  0x38   :  { %787 = vmatprep.subr.bf16.mxu0 %v3013_v53  ;;  %2748 = vmatpush3.bf16.msra.mxu1 %v3064_v6  ;;  %v3099_v53 = vld [vmem:[%s4079_s4 + $0x18] sm:$0xff]   ;;  %v3109_v6 = vld [vmem:[%s4079_s4 + $0x28] sm:$0xff]  }
  0x39   :  { %2749 = vmatprep.subr.bf16.mxu1 %v3115_v38 }
  0x3a   :  { %1138 = vmatmul.mubr.bf16.gmra.mrb[12].mxu1 %v3338_v55 }
  0x3b   :  { %788 = vmatpush1.bf16.msra.mxu0 %v3016_v56  ;;  %1145 = vmatprep.mubr.bf16.mxu1 %v3349_v58  ;;  %v3086_v56 = vld [vmem:[%s4078_s0 + $0xc8] ss:$12 sps:$4 sm:$0xff]  }
  0x3c   :  { %789 = vmatprep.subr.bf16.mxu0 %v3017_v57  ;;  %2750 = vmatpush3.bf16.msra.mxu1 %v3070_v11  ;;  %v3584_v57 = vld [vmem:[%s4079_s4 + $0x90] sm:$0xff]  }
  0x3d   :  { %2751 = vmatprep.subr.bf16.mxu1 %v3115_v38 }
  0x3f   :  { %790 = vmatpush1.bf16.msra.mxu0 %v3019_v60  ;;  %v3103_v60 = vld [vmem:[%s4079_s4 + $0x20] sm:$0xff]  }
  0x40   :  { %920 = vmatprep.subr.bf16.mxu0 %v3024_v61  ;;  %2752 = vmatpush3.bf16.msra.mxu1 %v3071_v14  ;;  %v3603_v61 = vld [vmem:[%s4079_s4 + $0x98] sm:$0xff]  }
  0x42   :  { %792 = vmatmul.mubr.bf16.vlgmr.msra.gmra.mrb[0].mxu0 %v3258_v34  ;;  %1146 = vmatmul.mubr.bf16.gmra.mrb[16].mxu1 %v3372_v0  ;;  %v2287_v34 = vcombine.high %v72_v32, %v72_v32 }
  0x43   :  { %921 = vmatpush1.bf16.msra.mxu0 %v3022_v63  ;;  %801 = vmatprep.mubr.bf16.mxu0 %v3269_v37  ;;  %v3091_v37 = vld [vmem:[%s4079_s4 + $0x40] sm:$0xff]  }
  0x44   :  { %1153 = vmatprep.mubr.bf16.mxu1 %v3378_v1  ;;  %922 = vmatprep.subr.bf16.mxu0 %v3031_v2  ;;  %v3616_v63 = vld [vmem:[%s4079_s4 + $0xa0] sm:$0xff]   ;;  %v3636_v2 = vld [vmem:[%s4079_s4 + $0xb0] sm:$0xff]  }
  0x45   :  { %2622 = vmatprep.subr.bf16.mxu1 %v3091_v37 }
  0x47   :  { %923 = vmatpush1.bf16.msra.mxu0 %v3029_v4  ;;  %v3090_v4 = vld [vmem:[%s4078_s0 + $0x128] ss:$0 sps:$4 sm:$0xff]  }
  0x48   :  { %924 = vmatprep.subr.bf16.mxu0 %v3041_v5  ;;  %v3107_v5 = vld [vmem:[%s4079_s4 + $0x68] sm:$0xff]  }
  0x4a   :  { %802 = vmatmul.mubr.bf16.gmra.mrb[4].mxu0 %v3283_v41  ;;  %1154 = vmatmul.mubr.bf16.gmra.mrb[20].mxu1 %v3028_v7  ;;  %v3093_v41 = vld [vmem:[%s4079_s4 + $0x48] sm:$0xff]  }
  0x4b   :  { %811 = vmatprep.mubr.bf16.mxu0 %v3294_v44  ;;  %1161 = vmatprep.mubr.bf16.mxu1 %v3032_v8  ;;  %v3095_v44 = vld [vmem:[%s4079_s4 + $0x50] sm:$0xff]  }
  0x4c   :  { %925 = vmatpush1.bf16.msra.mxu0 %v3039_v9  ;;  %v3111_v9 = vld [vmem:[%s4079_s4 + $0x70] sm:$0xff]  }
  0x4d   :  { %926 = vmatprep.subr.bf16.mxu0 %v3048_v10  ;;  %v3112_v10 = vld [vmem:[%s4079_s4 + $0x30] sm:$0xff]  }
  0x50   :  { %927 = vmatpush1.bf16.msra.mxu0 %v3046_v12 }
  0x51   :  { %928 = vmatprep.subr.bf16.mxu0 %v3058_v13 }
  0x52   :  { %812 = vmatmul.mubr.bf16.gmra.mrb[8].mxu0 %v3307_v47  ;;  %1162 = vmatmul.mubr.bf16.gmra.mrb[24].mxu1 %v3034_v15  ;;  %v3117_v47 = vmov 0  }
  0x53   :  { %821 = vmatprep.mubr.bf16.mxu0 %v3318_v50  ;;  %1169 = vmatprep.mubr.bf16.mxu1 %v3036_v16  ;;  %v3083_v50 = vld [vmem:[%s4078_s0 + $0x80] ss:$12 sps:$4 sm:$0xff]  }
  0x54   :  { %929 = vmatpush1.bf16.msra.mxu0 %v3056_v17 }
  0x55   :  { %930 = vmatprep.subr.bf16.mxu0 %v3069_v18 }
  0x58   :  { %931 = vmatpush1.bf16.msra.mxu0 %v3067_v19 }
  0x59   :  { %932 = vmatprep.subr.bf16.mxu0 %v3075_v20 }
  0x5a   :  { %822 = vmatmul.mubr.bf16.gmra.mrb[12].mxu0 %v3338_v55  ;;  %1170 = vmatmul.mubr.bf16.gmra.mrb[28].mxu1 %v3038_v21  ;;  %v3571_v55 = vld [vmem:[%s4079_s4 + $0x88] sm:$0xff]  }
  0x5b   :  { %831 = vmatprep.mubr.bf16.mxu0 %v3349_v58  ;;  %1177 = vmatprep.mubr.bf16.mxu1 %v3043_v22  ;;  %v3087_v58 = vld [vmem:[%s4078_s0 + $0xe0] ss:$12 sps:$4 sm:$0xff]  }
  0x5c   :  { %933 = vmatpush1.bf16.msra.mxu0 %v3073_v23 }
  0x5d   :  { %934 = vmatprep.subr.bf16.mxu0 %v3080_v24 }
  0x60   :  { %935 = vmatpush1.bf16.msra.mxu0 %v3078_v25 }
  0x61   :  { %2805 = vmatprep.subr.bf16.mxu0 %v3115_v38 }
  0x62   :  { %832 = vmatmul.mubr.bf16.gmra.mrb[16].mxu0 %v3372_v0  ;;  %1178 = vmatmul.mubr.bf16.gmra.mrb[32].mxu1 %v3045_v26  ;;  %v3626_v0 = vld [vmem:[%s4079_s4 + $0xa8] sm:$0xff]  }
  0x63   :  { %841 = vmatprep.mubr.bf16.mxu0 %v3378_v1  ;;  %1185 = vmatprep.mubr.bf16.mxu1 %v3049_v27  ;;  %v3089_v1 = vld [vmem:[%s4078_s0 + $0x110] ss:$12 sps:$4 sm:$0xff]  }
  0x6a   :  { %842 = vmatmul.mubr.bf16.gmra.mrb[20].mxu0 %v3028_v7  ;;  %1186 = vmatmul.mubr.bf16.gmra.mrb[36].mxu1 %v3051_v28 }
  0x6b   :  { %851 = vmatprep.mubr.bf16.mxu0 %v3032_v8  ;;  %1193 = vmatprep.mubr.bf16.mxu1 %v3053_v29 }
  0x72   :  { %852 = vmatmul.mubr.bf16.gmra.mrb[24].mxu0 %v3034_v15  ;;  %1194 = vmatmul.mubr.bf16.gmra.mrb[40].mxu1 %v3055_v30 }
  0x73   :  { %861 = vmatprep.mubr.bf16.mxu0 %v3036_v16  ;;  %1201 = vmatprep.mubr.bf16.mxu1 %v3060_v31 }
  0x7a   :  { %862 = vmatmul.mubr.bf16.gmra.mrb[28].mxu0 %v3038_v21  ;;  %1202 = vmatmul.mubr.bf16.gmra.mrb[44].mxu1 %v3062_v33  ;;  %v3113_v21 = vld [vmem:[%s4079_s4 + $0x78] sm:$0xff]  }
  0x7b   :  { %871 = vmatprep.mubr.bf16.mxu0 %v3043_v22  ;;  %1209 = vmatprep.mubr.bf16.mxu1 %v2287_v34  ;;  %v3114_v22 = vld [vmem:[%s4079_s4 + $0x38] sm:$0xff]  }
  0x82   :  { %872 = vmatmul.mubr.bf16.gmra.mrb[32].mxu0 %v3045_v26  ;;  %1210 = vmatmul.mubr.bf16.gmra.mrb[48].mxu1 %v2286_v35 }
  0x83   :  { %881 = vmatprep.mubr.bf16.mxu0 %v3049_v27  ;;  %2753 = vmatprep.mubr.msk.bf16.mxu1 %vm3116_vm0, %v3115_v38 }
  0x8a   :  { %882 = vmatmul.mubr.bf16.gmra.mrb[36].mxu0 %v3051_v28  ;;  %2754 = vmatmul.mubr.bf16.vlgmr.msra.gmra.mrb[52].mxu1 %v3072_v36 }
  0x8b   :  { %891 = vmatprep.mubr.bf16.mxu0 %v3053_v29  ;;  %2757 = vmatprep.mubr.msk.bf16.mxu1 %vm3116_vm0, %v3115_v38 }
  0x8c   :  { %2623 = vmatpush3.bf16.msra.mxu1 %v3092_v39 }
  0x8d   :  { %2624 = vmatprep.subr.bf16.mxu1 %v3093_v41 }
  0x90   :  { %2625 = vmatpush3.bf16.msra.mxu1 %v3094_v42 }
  0x91   :  { %2626 = vmatprep.subr.bf16.mxu1 %v3095_v44 }
  0x92   :  { %892 = vmatmul.mubr.bf16.gmra.mrb[40].mxu0 %v3055_v30  ;;  %2758 = vmatmul.mubr.bf16.gmra.mrb[56].mxu1 %v3076_v40 }
  0x93   :  { %901 = vmatprep.mubr.bf16.mxu0 %v3060_v31  ;;  %2761 = vmatprep.mubr.msk.bf16.mxu1 %vm3116_vm0, %v3115_v38 }
  0x94   :  { %2627 = vmatpush3.bf16.msra.mxu1 %v3096_v45 }
  0x95   :  { %2628 = vmatprep.subr.bf16.mxu1 %v3098_v51 }
  0x98   :  { %2629 = vmatpush3.bf16.msra.mxu1 %v3099_v53 }
  0x99   :  { %2630 = vmatprep.subr.bf16.mxu1 %v3102_v59 }
  0x9a   :  { %902 = vmatmul.mubr.bf16.gmra.mrb[44].mxu0 %v3062_v33  ;;  %2762 = vmatmul.mubr.bf16.gmra.mrb[60].mxu1 %v3077_v43 }
  0x9b   :  { %911 = vmatprep.mubr.bf16.mxu0 %v2287_v34  ;;  %2765 = vmatprep.mubr.msk.bf16.mxu1 %vm3116_vm0, %v3115_v38 }
  0x9c   :  { %2631 = vmatpush3.bf16.msra.mxu1 %v3103_v60 }
  0x9d   :  { %2632 = vmatprep.subr.bf16.mxu1 %v3107_v5 }
  0xa0   :  { %2633 = vmatpush3.bf16.msra.mxu1 %v3109_v6 }
  0xa1   :  { %2634 = vmatprep.subr.bf16.mxu1 %v3111_v9 }
  0xa2   :  { %912 = vmatmul.mubr.bf16.gmra.mrb[48].mxu0 %v2286_v35  ;;  %2766 = vmatmul.mubr.bf16.gmra.mrb[64].mxu1 %v3081_v46 }
  0xa3   :  { %952 = vmatprep.mubr.bf16.mxu0 %v3117_v47  ;;  %2769 = vmatprep.mubr.msk.bf16.mxu1 %vm3116_vm0, %v3115_v38 }
  0xa4   :  { %2635 = vmatpush3.bf16.msra.mxu1 %v3112_v10 }
  0xa5   :  { %2636 = vmatprep.subr.bf16.mxu1 %v3113_v21 }
  0xa8   :  { %2637 = vmatpush3.bf16.msra.mxu1 %v3114_v22 }
  0xa9   :  { %2873 = vmatprep.subr.bf16.mxu1 %v3115_v38 }
  0xaa   :  { %953 = vmatmul.mubr.bf16.vlgmr.msra.gmra.mrb[0].mxu0 %v3072_v36  ;;  %2770 = vmatmul.mubr.bf16.gmra.mrb[68].mxu1 %v3082_v48 }
  0xab   :  { %962 = vmatprep.mubr.bf16.mxu0 %v3117_v47  ;;  %2773 = vmatprep.mubr.msk.bf16.mxu1 %vm3116_vm0, %v3115_v38 }
  0xac   :  { %2806 = vmatpush3.bf16.msra.mxu0 %v3540_v49 }
  0xad   :  { %2807 = vmatprep.subr.bf16.mxu0 %v3115_v38 }
  0xb0   :  { %2808 = vmatpush3.bf16.msra.mxu0 %v3571_v55 }
  0xb1   :  { %2809 = vmatprep.subr.bf16.mxu0 %v3115_v38 }
  0xb2   :  { %963 = vmatmul.mubr.bf16.gmra.mrb[4].mxu0 %v3076_v40  ;;  %2774 = vmatmul.mubr.bf16.gmra.mrb[72].mxu1 %v3083_v50 }
  0xb3   :  { %972 = vmatprep.mubr.bf16.mxu0 %v3117_v47  ;;  %2777 = vmatprep.mubr.msk.bf16.mxu1 %vm3116_vm0, %v3115_v38 }
  0xb4   :  { %2810 = vmatpush3.bf16.msra.mxu0 %v3584_v57 }
  0xb5   :  { %2811 = vmatprep.subr.bf16.mxu0 %v3115_v38 }
  0xb8   :  { %2812 = vmatpush3.bf16.msra.mxu0 %v3603_v61 }
  0xb9   :  { %2813 = vmatprep.subr.bf16.mxu0 %v3115_v38 }
  0xba   :  { %973 = vmatmul.mubr.bf16.gmra.mrb[8].mxu0 %v3077_v43  ;;  %2778 = vmatmul.mubr.bf16.gmra.mrb[76].mxu1 %v3084_v52 }
  0xbb   :  { %982 = vmatprep.mubr.bf16.mxu0 %v3117_v47  ;;  %2781 = vmatprep.mubr.msk.bf16.mxu1 %vm3116_vm0, %v3115_v38 }
  0xbc   :  { %2814 = vmatpush3.bf16.msra.mxu0 %v3616_v63 }
  0xbd   :  { %2815 = vmatprep.subr.bf16.mxu0 %v3115_v38 }
  0xc0   :  { %2816 = vmatpush3.bf16.msra.mxu0 %v3626_v0 }
  0xc1   :  { %2817 = vmatprep.subr.bf16.mxu0 %v3115_v38 }
  0xc2   :  { %983 = vmatmul.mubr.bf16.gmra.mrb[12].mxu0 %v3081_v46  ;;  %2782 = vmatmul.mubr.bf16.gmra.mrb[80].mxu1 %v3085_v54 }
  0xc3   :  { %992 = vmatprep.mubr.bf16.mxu0 %v3117_v47  ;;  %2785 = vmatprep.mubr.msk.bf16.mxu1 %vm3116_vm0, %v3115_v38 }
  0xc4   :  { %2818 = vmatpush3.bf16.msra.mxu0 %v3636_v2 }
  0xc5   :  { %2819 = vmatprep.subr.bf16.mxu0 %v3115_v38 }
  0xc8   :  { %2820 = vmatpush3.bf16.msra.mxu0 %v3646_v3 }
  0xca   :  { %993 = vmatmul.mubr.bf16.gmra.mrb[16].mxu0 %v3082_v48  ;;  %2786 = vmatmul.mubr.bf16.gmra.mrb[84].mxu1 %v3086_v56 }
  0xcb   :  { %1002 = vmatprep.mubr.bf16.mxu0 %v3117_v47  ;;  %2789 = vmatprep.mubr.msk.bf16.mxu1 %vm3116_vm0, %v3115_v38 }
  0xd2   :  { %1003 = vmatmul.mubr.bf16.gmra.mrb[20].mxu0 %v3083_v50  ;;  %2790 = vmatmul.mubr.bf16.gmra.mrb[88].mxu1 %v3087_v58 }
  0xd3   :  { %1012 = vmatprep.mubr.bf16.mxu0 %v3117_v47  ;;  %2793 = vmatprep.mubr.msk.bf16.mxu1 %vm3116_vm0, %v3115_v38 }
  0xda   :  { %1013 = vmatmul.mubr.bf16.gmra.mrb[24].mxu0 %v3084_v52  ;;  %2794 = vmatmul.mubr.bf16.gmra.mrb[92].mxu1 %v3088_v62 }
  0xdb   :  { %1022 = vmatprep.mubr.bf16.mxu0 %v3117_v47  ;;  %2797 = vmatprep.mubr.msk.bf16.mxu1 %vm3116_vm0, %v3115_v38 }
  0xe2   :  { %1023 = vmatmul.mubr.bf16.gmra.mrb[28].mxu0 %v3085_v54  ;;  %2798 = vmatmul.mubr.bf16.gmra.mrb[96].mxu1 %v3089_v1 }
  0xe3   :  { %1032 = vmatprep.mubr.bf16.mxu0 %v3117_v47  ;;  %2801 = vmatprep.mubr.msk.bf16.mxu1 %vm3116_vm0, %v3115_v38 }
  0xea   :  { %1033 = vmatmul.mubr.bf16.gmra.mrb[32].mxu0 %v3086_v56  ;;  %2802 = vmatmul.mubr.bf16.gmra.mrb[100].mxu1 %v3090_v4 }
  0xeb   :  { %1042 = vmatprep.mubr.bf16.mxu0 %v3117_v47 }
  0xf2   :  { %1043 = vmatmul.mubr.bf16.gmra.mrb[36].mxu0 %v3087_v58 }
  0xf3   :  { %1052 = vmatprep.mubr.bf16.mxu0 %v3117_v47 }
  0xf5   :  { %v2523_v7 = vpop.f32.mrb[0].mxu1 }
  0xf6   :  { %v2524_v8 = vpop.f32.mrb[1].mxu1 }
  0xf7   :  { %v3666_v11 = vadd.f32 %v2524_v8, %v2523_v7  ;;  %v2526_v12 = vpop.f32.mrb[2].mxu1 }
  0xf8   :  { %v2527_v13 = vpop.f32.mrb[3].mxu1 }
  0xf9   :  { %v3668_v14 = vadd.f32 %v2527_v13, %v2526_v12 }
  0xfa   :  { %1053 = vmatmul.mubr.bf16.gmra.mrb[40].mxu0 %v3088_v62 }
  0xfb   :  { %1062 = vmatprep.mubr.bf16.mxu0 %v3117_v47 }
  0xfd   :  { %v2529_v15 = vpop.f32.mrb[4].mxu1 }
  0xfe   :  { %v2530_v16 = vpop.f32.mrb[5].mxu1 }
  0xff   :  { %v3671_v17 = vadd.f32 %v2530_v16, %v2529_v15  ;;  %v2532_v18 = vpop.f32.mrb[6].mxu1 }
 0x100   :  { %v2533_v19 = vpop.f32.mrb[7].mxu1 }
 0x101   :  { %v3673_v20 = vadd.f32 %v2533_v19, %v2532_v18 }
 0x102   :  { %1063 = vmatmul.mubr.bf16.gmra.mrb[44].mxu0 %v3089_v1 }
 0x103   :  { %1072 = vmatprep.mubr.bf16.mxu0 %v3117_v47 }
 0x105   :  { %v2535_v23 = vpop.f32.mrb[8].mxu1 }
 0x106   :  { %v2536_v24 = vpop.f32.mrb[9].mxu1 }
 0x107   :  { %v3682_v25 = vadd.f32 %v2536_v24, %v2535_v23  ;;  %v2538_v26 = vpop.f32.mrb[10].mxu1 }
 0x108   :  { %v2539_v27 = vpop.f32.mrb[11].mxu1 }
 0x109   :  { %v3685_v28 = vadd.f32 %v2539_v27, %v2538_v26 }
 0x10a   :  { %1073 = vmatmul.mubr.bf16.gmra.mrb[48].mxu0 %v3090_v4 }
 0x10b   :  { %2821 = vmatprep.mubr.msk.bf16.mxu0 %vm3116_vm0, %v3115_v38 }
 0x10d   :  { %v2541_v29 = vpop.f32.mrb[12].mxu1 }
 0x10e   :  { %v2542_v30 = vpop.f32.mrb[13].mxu1 }
 0x10f   :  { %v3689_v31 = vadd.f32 %v2542_v30, %v2541_v29  ;;  %v2544_v32 = vpop.f32.mrb[14].mxu1 }
 0x110   :  { %v2545_v33 = vpop.f32.mrb[15].mxu1 }
 0x111   :  { %v3691_v34 = vadd.f32 %v2545_v33, %v2544_v32 }
 0x115   :  { %v2547_v35 = vpop.f32.mrb[16].mxu1 }
 0x116   :  { %v2548_v36 = vpop.f32.mrb[17].mxu1 }
 0x117   :  { %v3693_v37 = vadd.f32 %v2548_v36, %v2547_v35  ;;  %v2550_v39 = vpop.f32.mrb[18].mxu1  ;;  %v1354_v35 = vlaneseq }
 0x118   :  { %v2551_v40 = vpop.f32.mrb[19].mxu1 }
 0x119   :  { %v3695_v41 = vadd.f32 %v2551_v40, %v2550_v39  ;;  %v3725_v39 = vshrl.u32 %v1354_v35, 7 }
 0x11d   :  { %v2553_v42 = vpop.f32.mrb[20].mxu1 }
 0x11e   :  { %v2554_v43 = vpop.f32.mrb[21].mxu1 }
 0x11f   :  { %v3697_v44 = vadd.f32 %v2554_v43, %v2553_v42  ;;  %v2556_v45 = vpop.f32.mrb[22].mxu1 }
 0x120   :  { %v2557_v46 = vpop.f32.mrb[23].mxu1 }
 0x121   :  { %v3699_v47 = vadd.f32 %v2557_v46, %v2556_v45 }
 0x125   :  { %v2559_v48 = vpop.f32.mrb[24].mxu1 }
 0x126   :  { %v2560_v50 = vpop.f32.mrb[25].mxu1 }
 0x127   :  { %v3701_v51 = vadd.f32 %v2560_v50, %v2559_v48  ;;  %v2562_v52 = vpop.f32.mrb[26].mxu1  ;;  %v1364_v48 = vsub.s32 2, %v3725_v39  ;;  %v170_v50 = vld [vmem:[%s4080_s2] sm:$0x7] }
 0x128   :  { %v2563_v53 = vpop.f32.mrb[27].mxu1 }
 0x129   :  { %v3703_v54 = vadd.f32 %v2563_v53, %v2562_v52  ;;  %v3736_v52 = vld [vmem:[%s4081_s3] sm:$0x7]  ;;  %v3738_v53 = vrot.slane %v170_v50, %v1364_v48 }
 0x12d   :  { %v2565_v56 = vpop.f32.mrb[28].mxu1 }
 0x12e   :  { %v2566_v58 = vpop.f32.mrb[29].mxu1 }
 0x12f   :  { %v3705_v59 = vadd.f32 %v2566_v58, %v2565_v56  ;;  %v2568_v60 = vpop.f32.mrb[30].mxu1 }
 0x130   :  { %v2569_v62 = vpop.f32.mrb[31].mxu1 }
 0x131   :  { %v3707_v1 = vadd.f32 %v2569_v62, %v2568_v60  ;;  %v3742_v60 = vrot.slane %v3736_v52, %v1364_v48 }
 0x135   :  { %v2571_v4 = vpop.f32.mrb[32].mxu1 }
 0x136   :  { %v2572_v5 = vpop.f32.mrb[33].mxu1 }
 0x137   :  { %v3709_v6 = vadd.f32 %v2572_v5, %v2571_v4  ;;  %v2574_v7 = vpop.f32.mrb[34].mxu1 }
 0x138   :  { %v2575_v8 = vpop.f32.mrb[35].mxu1 }
 0x139   :  { %v3711_v9 = vadd.f32 %v2575_v8, %v2574_v7 }
 0x13d   :  { %v2577_v10 = vpop.f32.mrb[36].mxu1 }
 0x13e   :  { %v2578_v12 = vpop.f32.mrb[37].mxu1 }
 0x13f   :  { %v3713_v13 = vadd.f32 %v2578_v12, %v2577_v10  ;;  %v2580_v15 = vpop.f32.mrb[38].mxu1 }
 0x140   :  { %v2581_v16 = vpop.f32.mrb[39].mxu1 }
 0x141   :  { %v3715_v18 = vadd.f32 %v2581_v16, %v2580_v15 }
 0x145   :  { %v2583_v19 = vpop.f32.mrb[40].mxu1 }
 0x146   :  { %v2584_v21 = vpop.f32.mrb[41].mxu1 }
 0x147   :  { %v3717_v22 = vadd.f32 %v2584_v21, %v2583_v19  ;;  %v2586_v23 = vpop.f32.mrb[42].mxu1 }
 0x148   :  { %v2587_v24 = vpop.f32.mrb[43].mxu1 }
 0x149   :  { %v3719_v26 = vadd.f32 %v2587_v24, %v2586_v23 }
 0x14d   :  { %v2589_v27 = vpop.f32.mrb[44].mxu1 }
 0x14e   :  { %v2590_v29 = vpop.f32.mrb[45].mxu1 }
 0x14f   :  { %v3721_v30 = vadd.f32 %v2590_v29, %v2589_v27  ;;  %v2592_v32 = vpop.f32.mrb[46].mxu1 }
 0x150   :  { %v2593_v33 = vpop.f32.mrb[47].mxu1 }
 0x151   :  { %v3723_v36 = vadd.f32 %v2593_v33, %v2592_v32 }
 0x155   :  { %v2595_v40 = vpop.f32.mrb[48].mxu1 }
 0x156   :  { %v2596_v42 = vpop.f32.mrb[49].mxu1 }
 0x157   :  { %v3727_v43 = vadd.f32 %v2596_v42, %v2595_v40  ;;  %v2598_v45 = vpop.f32.mrb[50].mxu1 }
 0x158   :  { %v2599_v46 = vpop.f32.mrb[51].mxu1 }
 0x15d   :  { %v1251_v56 = vpop.f32.mrb[52].mxu1 }
 0x15e   :  { %v1252_v58 = vadd.f32 %v3666_v11, %v1251_v56  ;;  %v2755_v62 = vpop.f32.mrb[53].mxu1 }
 0x15f   :  { %v1254_v4 = vpop.f32.mrb[54].mxu1 }
 0x160   :  { %v1371_v5 = vmul.f32 %v3738_v53, %v1252_v58  ;;  %v1255_v7 = vadd.f32 %v3668_v14, %v1254_v4  ;;  %v2756_v8 = vpop.f32.mrb[55].mxu1 }
 0x162   :  { %v1462_v10 = vadd.f32 %v3742_v60, %v1371_v5  ;;  %v1374_v12 = vmul.f32 %v3738_v53, %v1255_v7 }
 0x164   :  { %v1465_v15 = vadd.f32 %v3742_v60, %v1374_v12  ;;  %v1537_v19 = vmax.f32 %v1462_v10, 0.0 }
 0x165   :  { %v1259_v16 = vpop.f32.mrb[56].mxu1 }
 0x166   :  { %v1540_v21 = vmax.f32 %v1465_v15, 0.0  ;;  %v1260_v11 = vadd.f32 %v3671_v17, %v1259_v16  ;;  %v2759_v23 = vpop.f32.mrb[57].mxu1 }
 0x167   :  { %v1262_v24 = vpop.f32.mrb[58].mxu1 }
 0x168   :  { %v1612_v27 = vpack.c.bf16 %v1540_v21, %v1537_v19  ;;  %v1377_v29 = vmul.f32 %v3738_v53, %v1260_v11  ;;  %v1263_v32 = vadd.f32 %v3673_v20, %v1262_v24  ;;  %v2760_v14 = vpop.f32.mrb[59].mxu1  ;;  %v1360_v19 = vsub.s32 1, %v3725_v39 }
 0x16a   :  { %v1468_v33 = vadd.f32 %v3742_v60, %v1377_v29  ;;  %v1380_v35 = vmul.f32 %v3738_v53, %v1263_v32  ;;  %2822 = vmatmul.mubr.bf16.vlgmr.msra.gmra.mrb[52].mxu0 %v1612_v27  ;;  %v3773_v14 = vrot.slane %v170_v50, %v1360_v19 }
 0x16b   :  { %2825 = vmatprep.mubr.msk.bf16.mxu0 %vm3116_vm0, %v3115_v38 }
 0x16c   :  { %v1471_v40 = vadd.f32 %v3742_v60, %v1380_v35  ;;  %v1543_v17 = vmax.f32 %v1468_v33, 0.0  ;;  %v3783_v35 = vrot.slane %v3736_v52, %v1360_v19 }
 0x16d   :  { %v1267_v42 = vpop.f32.mrb[60].mxu1 }
 0x16e   :  { %v1546_v45 = vmax.f32 %v1471_v40, 0.0  ;;  %v1268_v46 = vadd.f32 %v3682_v25, %v1267_v42  ;;  %v2763_v48 = vpop.f32.mrb[61].mxu1  ;;  %v1356_v25 = vsub.s32 0, %v3725_v39 }
 0x16f   :  { %v1270_v56 = vpop.f32.mrb[62].mxu1 }
 0x170   :  { %v1383_v20 = vmul.f32 %v3738_v53, %v1268_v46  ;;  %v1271_v58 = vadd.f32 %v3685_v28, %v1270_v56  ;;  %v1615_v62 = vpack.c.bf16 %v1546_v45, %v1543_v17  ;;  %v2764_v4 = vpop.f32.mrb[63].mxu1  ;;  %v3770_v29 = vrot.slane %v170_v50, %v1356_v25 }
 0x172   :  { %v1474_v5 = vadd.f32 %v3742_v60, %v1383_v20  ;;  %v1386_v7 = vmul.f32 %v3738_v53, %v1271_v58  ;;  %2826 = vmatmul.mubr.bf16.gmra.mrb[56].mxu0 %v1615_v62 }
 0x173   :  { %2829 = vmatprep.mubr.msk.bf16.mxu0 %vm3116_vm0, %v3115_v38 }
 0x174   :  { %v1477_v8 = vadd.f32 %v3742_v60, %v1386_v7  ;;  %v1549_v12 = vmax.f32 %v1474_v5, 0.0 }
 0x175   :  { %v1275_v10 = vpop.f32.mrb[64].mxu1 }
 0x176   :  { %v1552_v15 = vmax.f32 %v1477_v8, 0.0  ;;  %v1276_v16 = vadd.f32 %v3689_v31, %v1275_v10  ;;  %v2767_v28 = vpop.f32.mrb[65].mxu1  ;;  %v3777_v31 = vrot.slane %v3736_v52, %v1356_v25 }
 0x177   :  { %v1278_v21 = vpop.f32.mrb[66].mxu1 }
 0x178   :  { %v1389_v11 = vmul.f32 %v3738_v53, %v1276_v16  ;;  %v1279_v23 = vadd.f32 %v3691_v34, %v1278_v21  ;;  %v1618_v24 = vpack.c.bf16 %v1552_v15, %v1549_v12  ;;  %v2768_v27 = vpop.f32.mrb[67].mxu1 }
 0x17a   :  { %v1392_v32 = vmul.f32 %v3738_v53, %v1279_v23  ;;  %2830 = vmatmul.mubr.bf16.gmra.mrb[60].mxu0 %v1618_v24  ;;  %v1480_v33 = vadd.f32 %v3742_v60, %v1389_v11 }
 0x17b   :  { %2833 = vmatprep.mubr.msk.bf16.mxu0 %vm3116_vm0, %v3115_v38 }
 0x17c   :  { %v1483_v39 = vadd.f32 %v3742_v60, %v1392_v32  ;;  %v1555_v20 = vmax.f32 %v1480_v33, 0.0 }
 0x17d   :  { %v954_v34 = vpop.f32.mrb[0].mxu0  ;;  %v1283_v42 = vpop.f32.mrb[68].mxu1 }
 0x17e   :  { %v1369_v40 = vmul.f32 %v3770_v29, %v954_v34  ;;  %v956_v17 = vpop.f32.mrb[1].mxu0  ;;  %v1558_v50 = vmax.f32 %v1483_v39, 0.0  ;;  %v1284_v45 = vadd.f32 %v3693_v37, %v1283_v42  ;;  %v2771_v48 = vpop.f32.mrb[69].mxu1 }
 0x17f   :  { %v1370_v46 = vmul.f32 %v3773_v14, %v956_v17  ;;  %v958_v56 = vpop.f32.mrb[2].mxu0  ;;  %v1286_v4 = vpop.f32.mrb[70].mxu1 }
 0x180   :  { %v1460_v58 = vadd.f32 %v3777_v31, %v1369_v40  ;;  %v1372_v62 = vmul.f32 %v3770_v29, %v958_v56  ;;  %v960_v5 = vpop.f32.mrb[3].mxu0  ;;  %v1395_v52 = vmul.f32 %v3738_v53, %v1284_v45  ;;  %v1287_v8 = vadd.f32 %v3695_v41, %v1286_v4  ;;  %v2772_v37 = vpop.f32.mrb[71].mxu1 }
 0x181   :  { %v1461_v7 = vadd.f32 %v3783_v35, %v1370_v46  ;;  %v1373_v10 = vmul.f32 %v3773_v14, %v960_v5  ;;  %v1621_v12 = vpack.c.bf16 %v1558_v50, %v1555_v20 }
 0x182   :  { %v1463_v25 = vadd.f32 %v3777_v31, %v1372_v62  ;;  %v1398_v15 = vmul.f32 %v3738_v53, %v1287_v8  ;;  %v1535_v28 = vmax.f32 %v1460_v58, 0.0  ;;  %v1486_v19 = vadd.f32 %v3742_v60, %v1395_v52 }
 0x183   :  { %v1464_v16 = vadd.f32 %v3783_v35, %v1373_v10  ;;  %2834 = vmatmul.mubr.bf16.gmra.mrb[64].mxu0 %v1621_v12  ;;  %v1536_v11 = vmax.f32 %v1461_v7, 0.0 }
 0x184   :  { %v1538_v21 = vmax.f32 %v1463_v25, 0.0  ;;  %v1489_v23 = vadd.f32 %v3742_v60, %v1398_v15  ;;  %2837 = vmatprep.mubr.msk.bf16.mxu0 %vm3116_vm0, %v3115_v38  ;;  %v1561_v46 = vmax.f32 %v1486_v19, 0.0 }
 0x185   :  { %v1539_v24 = vmax.f32 %v1464_v16, 0.0  ;;  %v964_v41 = vpop.f32.mrb[4].mxu0  ;;  %v1291_v33 = vpop.f32.mrb[72].mxu1 }
 0x186   :  { %v1610_v27 = vpack.c.bf16 %v1538_v21, %v1535_v28  ;;  %v1375_v32 = vmul.f32 %v3770_v29, %v964_v41  ;;  %v966_v39 = vpop.f32.mrb[5].mxu0  ;;  %v1564_v34 = vmax.f32 %v1489_v23, 0.0  ;;  %v1292_v40 = vadd.f32 %v3697_v44, %v1291_v33  ;;  %v2775_v17 = vpop.f32.mrb[73].mxu1 }
 0x187   :  { %v1376_v42 = vmul.f32 %v3773_v14, %v966_v39  ;;  %v968_v50 = vpop.f32.mrb[6].mxu0  ;;  %v1611_v45 = vpack.c.bf16 %v1539_v24, %v1536_v11  ;;  %v1294_v20 = vpop.f32.mrb[74].mxu1 }
 0x188   :  { %v1466_v48 = vadd.f32 %v3777_v31, %v1375_v32  ;;  %v1378_v56 = vmul.f32 %v3770_v29, %v968_v50  ;;  %v970_v58 = vpop.f32.mrb[7].mxu0  ;;  %v1401_v62 = vmul.f32 %v3738_v53, %v1292_v40  ;;  %v1295_v5 = vadd.f32 %v3699_v47, %v1294_v20  ;;  %v2776_v52 = vpop.f32.mrb[75].mxu1 }
 0x189   :  { %v1467_v4 = vadd.f32 %v3783_v35, %v1376_v42  ;;  %v1379_v44 = vmul.f32 %v3773_v14, %v970_v58  ;;  %1880 = vmatprep.mubr.bf16.mxu1 %v1611_v45  ;;  %v1624_v8 = vpack.c.bf16 %v1564_v34, %v1561_v46 }
 0x18a   :  { %v1469_v7 = vadd.f32 %v3777_v31, %v1378_v56  ;;  %1881 = vmatmul.mubr.bf16.vlgmr.msra.gmra.mrb[104].mxu1 %v1610_v27  ;;  %v1404_v10 = vmul.f32 %v3738_v53, %v1295_v5  ;;  %v1541_v25 = vmax.f32 %v1466_v48, 0.0  ;;  %v1492_v12 = vadd.f32 %v3742_v60, %v1401_v62 }
 0x18b   :  { %v1470_v37 = vadd.f32 %v3783_v35, %v1379_v44  ;;  %2881 = vmatpush3.bf16.msra.mxu1 %v3540_v49  ;;  %2838 = vmatmul.mubr.bf16.gmra.mrb[68].mxu0 %v1624_v8  ;;  %v1542_v47 = vmax.f32 %v1467_v4, 0.0 }
 0x18c   :  { %v1544_v15 = vmax.f32 %v1469_v7, 0.0  ;;  %2874 = vmatprep.subr.bf16.mxu1 %v3115_v38  ;;  %v1495_v16 = vadd.f32 %v3742_v60, %v1404_v10  ;;  %2841 = vmatprep.mubr.msk.bf16.mxu0 %vm3116_vm0, %v3115_v38  ;;  %v1567_v34 = vmax.f32 %v1492_v12, 0.0 }
 0x18d   :  { %v1545_v28 = vmax.f32 %v1470_v37, 0.0  ;;  %v974_v19 = vpop.f32.mrb[8].mxu0  ;;  %v1299_v11 = vpop.f32.mrb[76].mxu1 }
 0x18e   :  { %v1381_v21 = vmul.f32 %v3770_v29, %v974_v19  ;;  %v976_v23 = vpop.f32.mrb[9].mxu0  ;;  %v1613_v49 = vpack.c.bf16 %v1544_v15, %v1541_v25  ;;  %v1570_v24 = vmax.f32 %v1495_v16, 0.0  ;;  %v1300_v41 = vadd.f32 %v3701_v51, %v1299_v11  ;;  %v2779_v32 = vpop.f32.mrb[77].mxu1 }
 0x18f   :  { %v1382_v27 = vmul.f32 %v3773_v14, %v976_v23  ;;  %v978_v33 = vpop.f32.mrb[10].mxu0  ;;  %v1614_v39 = vpack.c.bf16 %v1545_v28, %v1542_v47  ;;  %2882 = vmatpush3.bf16.msra.mxu1 %v3571_v55  ;;  %v1302_v17 = vpop.f32.mrb[78].mxu1 }
 0x190   :  { %v1472_v40 = vadd.f32 %v3777_v31, %v1381_v21  ;;  %v1384_v42 = vmul.f32 %v3770_v29, %v978_v33  ;;  %v980_v50 = vpop.f32.mrb[11].mxu0  ;;  %2875 = vmatprep.subr.bf16.mxu1 %v3115_v38  ;;  %v1407_v45 = vmul.f32 %v3738_v53, %v1300_v41  ;;  %v1303_v46 = vadd.f32 %v3703_v54, %v1302_v17  ;;  %v2780_v56 = vpop.f32.mrb[79].mxu1 }
 0x191   :  { %v1473_v51 = vadd.f32 %v3783_v35, %v1382_v27  ;;  %v1385_v48 = vmul.f32 %v3773_v14, %v980_v50  ;;  %1888 = vmatprep.mubr.bf16.mxu1 %v1614_v39  ;;  %v1627_v20 = vpack.c.bf16 %v1570_v24, %v1567_v34 }
 0x192   :  { %v1475_v55 = vadd.f32 %v3777_v31, %v1384_v42  ;;  %1889 = vmatmul.mubr.bf16.gmra.mrb[108].mxu1 %v1613_v49  ;;  %v1410_v58 = vmul.f32 %v3738_v53, %v1303_v46  ;;  %v1547_v4 = vmax.f32 %v1472_v40, 0.0  ;;  %v1498_v5 = vadd.f32 %v3742_v60, %v1407_v45 }
 0x193   :  { %v1476_v62 = vadd.f32 %v3783_v35, %v1385_v48  ;;  %2883 = vmatpush3.bf16.msra.mxu1 %v3584_v57  ;;  %2842 = vmatmul.mubr.bf16.gmra.mrb[72].mxu0 %v1627_v20  ;;  %v1548_v54 = vmax.f32 %v1473_v51, 0.0 }
 0x194   :  { %v1550_v44 = vmax.f32 %v1475_v55, 0.0  ;;  %2876 = vmatprep.subr.bf16.mxu1 %v3115_v38  ;;  %v1501_v52 = vadd.f32 %v3742_v60, %v1410_v58  ;;  %2845 = vmatprep.mubr.msk.bf16.mxu0 %vm3116_vm0, %v3115_v38  ;;  %v1573_v21 = vmax.f32 %v1498_v5, 0.0 }
 0x195   :  { %v1551_v7 = vmax.f32 %v1476_v62, 0.0  ;;  %v984_v8 = vpop.f32.mrb[12].mxu0  ;;  %v1307_v37 = vpop.f32.mrb[80].mxu1 }
 0x196   :  { %v1387_v10 = vmul.f32 %v3770_v29, %v984_v8  ;;  %v986_v25 = vpop.f32.mrb[13].mxu0  ;;  %v1616_v57 = vpack.c.bf16 %v1550_v44, %v1547_v4  ;;  %v1576_v12 = vmax.f32 %v1501_v52, 0.0  ;;  %v1308_v15 = vadd.f32 %v3705_v59, %v1307_v37  ;;  %v2783_v16 = vpop.f32.mrb[81].mxu1 }
 0x197   :  { %v1388_v47 = vmul.f32 %v3773_v14, %v986_v25  ;;  %v988_v28 = vpop.f32.mrb[14].mxu0  ;;  %v1617_v19 = vpack.c.bf16 %v1551_v7, %v1548_v54  ;;  %2884 = vmatpush3.bf16.msra.mxu1 %v3603_v61  ;;  %v1310_v49 = vpop.f32.mrb[82].mxu1 }
 0x198   :  { %v1478_v11 = vadd.f32 %v3777_v31, %v1387_v10  ;;  %v1390_v23 = vmul.f32 %v3770_v29, %v988_v28  ;;  %v990_v24 = vpop.f32.mrb[15].mxu0  ;;  %2877 = vmatprep.subr.bf16.mxu1 %v3115_v38  ;;  %v1413_v41 = vmul.f32 %v3738_v53, %v1308_v15  ;;  %v1311_v27 = vadd.f32 %v3707_v1, %v1310_v49  ;;  %v2784_v33 = vpop.f32.mrb[83].mxu1 }
 0x199   :  { %v1479_v59 = vadd.f32 %v3783_v35, %v1388_v47  ;;  %v1391_v32 = vmul.f32 %v3773_v14, %v990_v24  ;;  %1896 = vmatprep.mubr.bf16.mxu1 %v1617_v19  ;;  %v1630_v39 = vpack.c.bf16 %v1576_v12, %v1573_v21 }
 0x19a   :  { %v1481_v61 = vadd.f32 %v3777_v31, %v1390_v23  ;;  %1897 = vmatmul.mubr.bf16.gmra.mrb[112].mxu1 %v1616_v57  ;;  %v1416_v34 = vmul.f32 %v3738_v53, %v1311_v27  ;;  %v1553_v42 = vmax.f32 %v1478_v11, 0.0  ;;  %v1504_v17 = vadd.f32 %v3742_v60, %v1413_v41 }
 0x19b   :  { %v1482_v40 = vadd.f32 %v3783_v35, %v1391_v32  ;;  %2885 = vmatpush3.bf16.msra.mxu1 %v3616_v63  ;;  %2846 = vmatmul.mubr.bf16.gmra.mrb[76].mxu0 %v1630_v39  ;;  %v1554_v1 = vmax.f32 %v1479_v59, 0.0 }
 0x19c   :  { %v1556_v50 = vmax.f32 %v1481_v61, 0.0  ;;  %2878 = vmatprep.subr.bf16.mxu1 %v3115_v38  ;;  %v1507_v45 = vadd.f32 %v3742_v60, %v1416_v34  ;;  %2849 = vmatprep.mubr.msk.bf16.mxu0 %vm3116_vm0, %v3115_v38  ;;  %v1579_v54 = vmax.f32 %v1504_v17, 0.0 }
 0x19d   :  { %v1557_v51 = vmax.f32 %v1482_v40, 0.0  ;;  %v994_v46 = vpop.f32.mrb[16].mxu0  ;;  %v1315_v56 = vpop.f32.mrb[84].mxu1 }
 0x19e   :  { %v1393_v48 = vmul.f32 %v3770_v29, %v994_v46  ;;  %v996_v55 = vpop.f32.mrb[17].mxu0  ;;  %v1619_v63 = vpack.c.bf16 %v1556_v50, %v1553_v42  ;;  %v1582_v20 = vmax.f32 %v1507_v45, 0.0  ;;  %v1316_v58 = vadd.f32 %v3709_v6, %v1315_v56  ;;  %v2787_v4 = vpop.f32.mrb[85].mxu1 }
 0x19f   :  { %v1394_v62 = vmul.f32 %v3773_v14, %v996_v55  ;;  %v998_v5 = vpop.f32.mrb[18].mxu0  ;;  %v1620_v44 = vpack.c.bf16 %v1557_v51, %v1554_v1  ;;  %2886 = vmatpush3.bf16.msra.mxu1 %v3626_v0  ;;  %v1318_v8 = vpop.f32.mrb[86].mxu1 }
 0x1a0   :  { %v1484_v52 = vadd.f32 %v3777_v31, %v1393_v48  ;;  %v1396_v7 = vmul.f32 %v3770_v29, %v998_v5  ;;  %v1000_v10 = vpop.f32.mrb[19].mxu0  ;;  %2879 = vmatprep.subr.bf16.mxu1 %v3115_v38  ;;  %v1419_v37 = vmul.f32 %v3738_v53, %v1316_v58  ;;  %v1319_v25 = vadd.f32 %v3711_v9, %v1318_v8  ;;  %v2788_v12 = vpop.f32.mrb[87].mxu1 }
 0x1a1   :  { %v1485_v6 = vadd.f32 %v3783_v35, %v1394_v62  ;;  %v1397_v57 = vmul.f32 %v3773_v14, %v1000_v10  ;;  %1904 = vmatprep.mubr.bf16.mxu1 %v1620_v44  ;;  %v1633_v15 = vpack.c.bf16 %v1582_v20, %v1579_v54 }
 0x1a2   :  { %v1487_v0 = vadd.f32 %v3777_v31, %v1396_v7  ;;  %1905 = vmatmul.mubr.bf16.gmra.mrb[116].mxu1 %v1619_v63  ;;  %v1422_v47 = vmul.f32 %v3738_v53, %v1319_v25  ;;  %v1559_v28 = vmax.f32 %v1484_v52, 0.0  ;;  %v1510_v19 = vadd.f32 %v3742_v60, %v1419_v37 }
 0x1a3   :  { %v1488_v16 = vadd.f32 %v3783_v35, %v1397_v57  ;;  %2887 = vmatpush3.bf16.msra.mxu1 %v3636_v2  ;;  %2850 = vmatmul.mubr.bf16.gmra.mrb[80].mxu0 %v1633_v15  ;;  %v1560_v9 = vmax.f32 %v1485_v6, 0.0 }
 0x1a4   :  { %v1562_v21 = vmax.f32 %v1487_v0, 0.0  ;;  %2880 = vmatprep.subr.bf16.mxu1 %v3115_v38  ;;  %v1513_v11 = vadd.f32 %v3742_v60, %v1422_v47  ;;  %2853 = vmatprep.mubr.msk.bf16.mxu0 %vm3116_vm0, %v3115_v38  ;;  %v1585_v40 = vmax.f32 %v1510_v19, 0.0 }
 0x1a5   :  { %v1563_v23 = vmax.f32 %v1488_v16, 0.0  ;;  %v1004_v49 = vpop.f32.mrb[20].mxu0  ;;  %v1323_v41 = vpop.f32.mrb[88].mxu1 }
 0x1a6   :  { %v1399_v24 = vmul.f32 %v3770_v29, %v1004_v49  ;;  %v1006_v59 = vpop.f32.mrb[21].mxu0  ;;  %v1622_v2 = vpack.c.bf16 %v1562_v21, %v1559_v28  ;;  %v1588_v27 = vmax.f32 %v1513_v11, 0.0  ;;  %v1324_v32 = vadd.f32 %v3713_v13, %v1323_v41  ;;  %v2791_v61 = vpop.f32.mrb[89].mxu1 }
 0x1a7   :  { %v1400_v33 = vmul.f32 %v3773_v14, %v1006_v59  ;;  %v1008_v39 = vpop.f32.mrb[22].mxu0  ;;  %v1623_v34 = vpack.c.bf16 %v1563_v23, %v1560_v9  ;;  %2888 = vmatpush3.bf16.msra.mxu1 %v3646_v3  ;;  %v1326_v50 = vpop.f32.mrb[90].mxu1 }
 0x1a8   :  { %v1490_v42 = vadd.f32 %v3777_v31, %v1399_v24  ;;  %v1402_v17 = vmul.f32 %v3770_v29, %v1008_v39  ;;  %v1010_v1 = vpop.f32.mrb[23].mxu0  ;;  %v1425_v45 = vmul.f32 %v3738_v53, %v1324_v32  ;;  %v1327_v13 = vadd.f32 %v3715_v18, %v1326_v50  ;;  %v2792_v48 = vpop.f32.mrb[91].mxu1 }
 0x1a9   :  { %v1491_v51 = vadd.f32 %v3783_v35, %v1400_v33  ;;  %v1403_v46 = vmul.f32 %v3773_v14, %v1010_v1  ;;  %1912 = vmatprep.mubr.bf16.mxu1 %v1623_v34  ;;  %v1636_v3 = vpack.c.bf16 %v1588_v27, %v1585_v40 }
 0x1aa   :  { %v1493_v56 = vadd.f32 %v3777_v31, %v1402_v17  ;;  %1913 = vmatmul.mubr.bf16.gmra.mrb[120].mxu1 %v1622_v2  ;;  %v1428_v55 = vmul.f32 %v3738_v53, %v1327_v13  ;;  %v1565_v20 = vmax.f32 %v1490_v42, 0.0  ;;  %v1516_v58 = vadd.f32 %v3742_v60, %v1425_v45 }
 0x1ab   :  { %v1494_v63 = vadd.f32 %v3783_v35, %v1403_v46  ;;  %2854 = vmatmul.mubr.bf16.gmra.mrb[84].mxu0 %v1636_v3  ;;  %v1566_v4 = vmax.f32 %v1491_v51, 0.0 }
 0x1ac   :  { %v1568_v62 = vmax.f32 %v1493_v56, 0.0  ;;  %v1519_v18 = vadd.f32 %v3742_v60, %v1428_v55  ;;  %2857 = vmatprep.mubr.msk.bf16.mxu0 %vm3116_vm0, %v3115_v38  ;;  %v1591_v0 = vmax.f32 %v1516_v58, 0.0 }
 0x1ad   :  { %v1569_v5 = vmax.f32 %v1494_v63, 0.0  ;;  %v1014_v44 = vpop.f32.mrb[24].mxu0  ;;  %v1331_v52 = vpop.f32.mrb[92].mxu1 }
 0x1ae   :  { %v1405_v54 = vmul.f32 %v3770_v29, %v1014_v44  ;;  %v1016_v7 = vpop.f32.mrb[25].mxu0  ;;  %v1625_v8 = vpack.c.bf16 %v1568_v62, %v1565_v20  ;;  %v1594_v10 = vmax.f32 %v1519_v18, 0.0  ;;  %v1332_v37 = vadd.f32 %v3717_v22, %v1331_v52  ;;  %v2795_v25 = vpop.f32.mrb[93].mxu1 }
 0x1af   :  { %v1406_v6 = vmul.f32 %v3773_v14, %v1016_v7  ;;  %v1018_v57 = vpop.f32.mrb[26].mxu0  ;;  %v1626_v12 = vpack.c.bf16 %v1569_v5, %v1566_v4  ;;  %v1334_v16 = vpop.f32.mrb[94].mxu1 }
 0x1b0   :  { %v1496_v15 = vadd.f32 %v3777_v31, %v1405_v54  ;;  %v1408_v47 = vmul.f32 %v3770_v29, %v1018_v57  ;;  %v1020_v28 = vpop.f32.mrb[27].mxu0  ;;  %v1431_v19 = vmul.f32 %v3738_v53, %v1332_v37  ;;  %v1335_v9 = vadd.f32 %v3719_v26, %v1334_v16  ;;  %v2796_v11 = vpop.f32.mrb[95].mxu1 }
 0x1b1   :  { %v1497_v21 = vadd.f32 %v3783_v35, %v1406_v6  ;;  %v1409_v22 = vmul.f32 %v3773_v14, %v1020_v28  ;;  %1920 = vmatprep.mubr.bf16.mxu1 %v1626_v12  ;;  %v1639_v49 = vpack.c.bf16 %v1594_v10, %v1591_v0 }
 0x1b2   :  { %v1499_v23 = vadd.f32 %v3777_v31, %v1408_v47  ;;  %1921 = vmatmul.mubr.bf16.gmra.mrb[124].mxu1 %v1625_v8  ;;  %v1434_v24 = vmul.f32 %v3738_v53, %v1335_v9  ;;  %v1571_v59 = vmax.f32 %v1496_v15, 0.0  ;;  %v1522_v2 = vadd.f32 %v3742_v60, %v1431_v19 }
 0x1b3   :  { %v1500_v41 = vadd.f32 %v3783_v35, %v1409_v22  ;;  %2858 = vmatmul.mubr.bf16.gmra.mrb[88].mxu0 %v1639_v49  ;;  %v1572_v32 = vmax.f32 %v1497_v21, 0.0 }
 0x1b4   :  { %v1574_v27 = vmax.f32 %v1499_v23, 0.0  ;;  %v1525_v26 = vadd.f32 %v3742_v60, %v1434_v24  ;;  %2861 = vmatprep.mubr.msk.bf16.mxu0 %vm3116_vm0, %v3115_v38  ;;  %v1597_v46 = vmax.f32 %v1522_v2, 0.0 }
 0x1b5   :  { %v1575_v33 = vmax.f32 %v1500_v41, 0.0  ;;  %v1024_v61 = vpop.f32.mrb[28].mxu0  ;;  %v1339_v34 = vpop.f32.mrb[96].mxu1 }
 0x1b6   :  { %v1411_v39 = vmul.f32 %v3770_v29, %v1024_v61  ;;  %v1026_v40 = vpop.f32.mrb[29].mxu0  ;;  %v1628_v42 = vpack.c.bf16 %v1574_v27, %v1571_v59  ;;  %v1600_v17 = vmax.f32 %v1525_v26, 0.0  ;;  %v1340_v50 = vadd.f32 %v3721_v30, %v1339_v34  ;;  %v2799_v45 = vpop.f32.mrb[97].mxu1 }
 0x1b7   :  { %v1412_v1 = vmul.f32 %v3773_v14, %v1026_v40  ;;  %v1028_v51 = vpop.f32.mrb[30].mxu0  ;;  %v1629_v13 = vpack.c.bf16 %v1575_v33, %v1572_v32  ;;  %v1342_v3 = vpop.f32.mrb[98].mxu1 }
 0x1b8   :  { %v1502_v48 = vadd.f32 %v3777_v31, %v1411_v39  ;;  %v1414_v56 = vmul.f32 %v3770_v29, %v1028_v51  ;;  %v1030_v55 = vpop.f32.mrb[31].mxu0  ;;  %v1437_v63 = vmul.f32 %v3738_v53, %v1340_v50  ;;  %v1343_v58 = vadd.f32 %v3723_v36, %v1342_v3  ;;  %v2800_v62 = vpop.f32.mrb[99].mxu1 }
 0x1b9   :  { %v1503_v20 = vadd.f32 %v3783_v35, %v1412_v1  ;;  %v1415_v30 = vmul.f32 %v3773_v14, %v1030_v55  ;;  %1928 = vmatprep.mubr.bf16.mxu1 %v1629_v13  ;;  %v1642_v18 = vpack.c.bf16 %v1600_v17, %v1597_v46 }
 0x1ba   :  { %v1505_v4 = vadd.f32 %v3777_v31, %v1414_v56  ;;  %1929 = vmatmul.mubr.bf16.gmra.mrb[128].mxu1 %v1628_v42  ;;  %v1528_v5 = vadd.f32 %v3742_v60, %v1437_v63  ;;  %v1440_v44 = vmul.f32 %v3738_v53, %v1343_v58  ;;  %v1577_v52 = vmax.f32 %v1502_v48, 0.0 }
 0x1bb   :  { %v1506_v54 = vadd.f32 %v3783_v35, %v1415_v30  ;;  %2862 = vmatmul.mubr.bf16.gmra.mrb[92].mxu0 %v1642_v18  ;;  %v1578_v8 = vmax.f32 %v1503_v20, 0.0 }
 0x1bc   :  { %v1580_v7 = vmax.f32 %v1505_v4, 0.0  ;;  %v1531_v36 = vadd.f32 %v3742_v60, %v1440_v44  ;;  %v1603_v6 = vmax.f32 %v1528_v5, 0.0 }
 0x1bd   :  { %v1581_v10 = vmax.f32 %v1506_v54, 0.0  ;;  %v1034_v37 = vpop.f32.mrb[32].mxu0  ;;  %v1347_v57 = vpop.f32.mrb[100].mxu1 }
 0x1be   :  { %v1417_v25 = vmul.f32 %v3770_v29, %v1034_v37  ;;  %v1036_v12 = vpop.f32.mrb[33].mxu0  ;;  %v1631_v0 = vpack.c.bf16 %v1580_v7, %v1577_v52  ;;  %v1606_v15 = vmax.f32 %v1531_v36, 0.0  ;;  %v3928_v47 = vadd.f32 %v3727_v43, %v1347_v57  ;;  %v2803_v21 = vpop.f32.mrb[101].mxu1 }
 0x1bf   :  { %v1418_v16 = vmul.f32 %v3773_v14, %v1036_v12  ;;  %v1038_v28 = vpop.f32.mrb[34].mxu0  ;;  %v1632_v19 = vpack.c.bf16 %v1581_v10, %v1578_v8  ;;  %v1350_v23 = vpop.f32.mrb[102].mxu1 }
 0x1c0   :  { %v1508_v9 = vadd.f32 %v3777_v31, %v1417_v25  ;;  %v1420_v22 = vmul.f32 %v3770_v29, %v1038_v28  ;;  %v1040_v11 = vpop.f32.mrb[35].mxu0  ;;  %v3933_v49 = vpack.c.bf16 %v1606_v15, %v1603_v6  ;;  %v2804_v43 = vpop.f32.mrb[103].mxu1 }
 0x1c1   :  { %v1509_v24 = vadd.f32 %v3783_v35, %v1418_v16  ;;  %v1421_v41 = vmul.f32 %v3773_v14, %v1040_v11  ;;  %1936 = vmatprep.mubr.bf16.mxu1 %v1632_v19 }
 0x1c2   :  { %v1511_v59 = vadd.f32 %v3777_v31, %v1420_v22  ;;  %1937 = vmatmul.mubr.bf16.gmra.mrb[132].mxu1 %v1631_v0  ;;  %v1583_v27 = vmax.f32 %v1508_v9, 0.0 }
 0x1c3   :  { %v1512_v2 = vadd.f32 %v3783_v35, %v1421_v41  ;;  %v1584_v26 = vmax.f32 %v1509_v24, 0.0 }
 0x1c4   :  { %v1586_v32 = vmax.f32 %v1511_v59, 0.0 }
 0x1c5   :  { %v1587_v33 = vmax.f32 %v1512_v2, 0.0  ;;  %v1044_v61 = vpop.f32.mrb[36].mxu0 }
 0x1c6   :  { %v1423_v39 = vmul.f32 %v3770_v29, %v1044_v61  ;;  %v1046_v34 = vpop.f32.mrb[37].mxu0  ;;  %v1634_v40 = vpack.c.bf16 %v1586_v32, %v1583_v27 }
 0x1c7   :  { %v1424_v42 = vmul.f32 %v3773_v14, %v1046_v34  ;;  %v1048_v17 = vpop.f32.mrb[38].mxu0  ;;  %v1635_v50 = vpack.c.bf16 %v1587_v33, %v1584_v26 }
 0x1c8   :  { %v1514_v1 = vadd.f32 %v3777_v31, %v1423_v39  ;;  %v1426_v45 = vmul.f32 %v3770_v29, %v1048_v17  ;;  %v1050_v51 = vpop.f32.mrb[39].mxu0 }
 0x1c9   :  { %v1515_v13 = vadd.f32 %v3783_v35, %v1424_v42  ;;  %v1427_v46 = vmul.f32 %v3773_v14, %v1050_v51  ;;  %1944 = vmatprep.mubr.bf16.mxu1 %v1635_v50 }
 0x1ca   :  { %v1517_v48 = vadd.f32 %v3777_v31, %v1426_v45  ;;  %1945 = vmatmul.mubr.bf16.gmra.mrb[136].mxu1 %v1634_v40  ;;  %v1589_v3 = vmax.f32 %v1514_v1, 0.0 }
 0x1cb   :  { %v1518_v56 = vadd.f32 %v3783_v35, %v1427_v46  ;;  %v1590_v63 = vmax.f32 %v1515_v13, 0.0 }
 0x1cc   :  { %v1592_v55 = vmax.f32 %v1517_v48, 0.0 }
 0x1cd   :  { %v1593_v20 = vmax.f32 %v1518_v56, 0.0  ;;  %v1054_v58 = vpop.f32.mrb[40].mxu0 }
 0x1ce   :  { %v1429_v30 = vmul.f32 %v3770_v29, %v1054_v58  ;;  %v1056_v62 = vpop.f32.mrb[41].mxu0  ;;  %v1637_v4 = vpack.c.bf16 %v1592_v55, %v1589_v3 }
 0x1cf   :  { %v1430_v18 = vmul.f32 %v3773_v14, %v1056_v62  ;;  %v1058_v5 = vpop.f32.mrb[42].mxu0  ;;  %v1638_v44 = vpack.c.bf16 %v1593_v20, %v1590_v63 }
 0x1d0   :  { %v1520_v54 = vadd.f32 %v3777_v31, %v1429_v30  ;;  %v1432_v52 = vmul.f32 %v3770_v29, %v1058_v5  ;;  %v1060_v7 = vpop.f32.mrb[43].mxu0 }
 0x1d1   :  { %v1521_v8 = vadd.f32 %v3783_v35, %v1430_v18  ;;  %v1433_v36 = vmul.f32 %v3773_v14, %v1060_v7  ;;  %1952 = vmatprep.mubr.bf16.mxu1 %v1638_v44 }
 0x1d2   :  { %v1523_v10 = vadd.f32 %v3777_v31, %v1432_v52  ;;  %1953 = vmatmul.mubr.bf16.gmra.mrb[140].mxu1 %v1637_v4  ;;  %v1595_v6 = vmax.f32 %v1520_v54, 0.0  ;;  %v3982_v54 = vld [vmem:[%s4082_s5] ss:$0 sm:$0xff] }
 0x1d3   :  { %v1524_v37 = vadd.f32 %v3783_v35, %v1433_v36  ;;  %v1596_v57 = vmax.f32 %v1521_v8, 0.0 }
 0x1d4   :  { %v1598_v25 = vmax.f32 %v1523_v10, 0.0 }
 0x1d5   :  { %v1599_v12 = vmax.f32 %v1524_v37, 0.0  ;;  %v1064_v0 = vpop.f32.mrb[44].mxu0 }
 0x1d6   :  { %v1435_v15 = vmul.f32 %v3770_v29, %v1064_v0  ;;  %v1066_v16 = vpop.f32.mrb[45].mxu0  ;;  %v1640_v28 = vpack.c.bf16 %v1598_v25, %v1595_v6 }
 0x1d7   :  { %v1436_v19 = vmul.f32 %v3773_v14, %v1066_v16  ;;  %v1068_v21 = vpop.f32.mrb[46].mxu0  ;;  %v1641_v9 = vpack.c.bf16 %v1599_v12, %v1596_v57 }
 0x1d8   :  { %v1526_v22 = vadd.f32 %v3777_v31, %v1435_v15  ;;  %v1438_v11 = vmul.f32 %v3770_v29, %v1068_v21  ;;  %v1070_v23 = vpop.f32.mrb[47].mxu0 }
 0x1d9   :  { %v1527_v24 = vadd.f32 %v3783_v35, %v1436_v19  ;;  %v1439_v41 = vmul.f32 %v3773_v14, %v1070_v23  ;;  %1960 = vmatprep.mubr.bf16.mxu1 %v1641_v9 }
 0x1da   :  { %v1529_v43 = vadd.f32 %v3777_v31, %v1438_v11  ;;  %1961 = vmatmul.mubr.bf16.gmra.mrb[144].mxu1 %v1640_v28  ;;  %v1601_v2 = vmax.f32 %v1526_v22, 0.0 }
 0x1db   :  { %v1530_v59 = vadd.f32 %v3783_v35, %v1439_v41  ;;  %v1602_v32 = vmax.f32 %v1527_v24, 0.0 }
 0x1dc   :  { %v1604_v27 = vmax.f32 %v1529_v43, 0.0 }
 0x1dd   :  { %v1605_v26 = vmax.f32 %v1530_v59, 0.0  ;;  %v1074_v33 = vpop.f32.mrb[48].mxu0 }
 0x1de   :  { %v1441_v61 = vmul.f32 %v3770_v29, %v1074_v33  ;;  %v1076_v39 = vpop.f32.mrb[49].mxu0  ;;  %v1643_v34 = vpack.c.bf16 %v1604_v27, %v1601_v2  ;;  %v1443_v29 = vmul.f32 %v3738_v53, %v3928_v47 }
 0x1df   :  { %v1442_v40 = vmul.f32 %v3773_v14, %v1076_v39  ;;  %v1078_v42 = vpop.f32.mrb[50].mxu0  ;;  %v1644_v17 = vpack.c.bf16 %v1605_v26, %v1602_v32 }
 0x1e0   :  { %v1532_v50 = vadd.f32 %v3777_v31, %v1441_v61  ;;  %v1079_v1 = vpop.f32.mrb[51].mxu0  ;;  %v1534_v14 = vadd.f32 %v3742_v60, %v1443_v29 }
 0x1e1   :  { %v1533_v45 = vadd.f32 %v3783_v35, %v1442_v40  ;;  %1968 = vmatprep.mubr.bf16.mxu1 %v1644_v17 }
 0x1e2   :  { %1969 = vmatmul.mubr.bf16.gmra.mrb[148].mxu1 %v1643_v34  ;;  %v1607_v13 = vmax.f32 %v1532_v50, 0.0  ;;  %v1609_v31 = vmax.f32 %v1534_v14, 0.0 }
 0x1e3   :  { %v1608_v51 = vmax.f32 %v1533_v45, 0.0 }
 0x1e4   :  { %v1646_v48 = vpack.c.bf16 %v1607_v13, %v1607_v13  ;;  %v1648_v35 = vpack.c.bf16 %v1609_v31, %v1609_v31 }
 0x1e5   :  { %v1647_v46 = vpack.c.bf16 %v1608_v51, %v1608_v51 }
 0x1e7   :  { %1976 = vmatprep.mubr.bf16.mxu1 %v1647_v46 }
 0x1ea   :  { %1977 = vmatmul.mubr.bf16.gmra.mrb[152].mxu1 %v1646_v48 }
 0x1eb   :  { %2865 = vmatprep.mubr.msk.bf16.mxu1 %vm3116_vm0, %v3115_v38 }
 0x1f2   :  { %2866 = vmatmul.mubr.bf16.vlgmr.msra.gmra.mrb[156].mxu1 %v3933_v49 }
 0x1f3   :  { %2869 = vmatprep.mubr.msk.bf16.mxu1 %vm3116_vm0, %v3115_v38 }
 0x1fa   :  { %2870 = vmatmul.mubr.bf16.gmra.mrb[160].mxu1 %v1648_v35 }
 0x23d   :  { %v2018_v56 = vpop.f32.mrb[52].mxu0 }
 0x23e   :  { %v2823_v3 = vpop.f32.mrb[53].mxu0 }
 0x23f   :  { %v2021_v55 = vpop.f32.mrb[54].mxu0 }
 0x240   :  { %v2824_v63 = vpop.f32.mrb[55].mxu0 }
 0x245   :  { %v2026_v20 = vpop.f32.mrb[56].mxu0 }
 0x246   :  { %v2827_v58 = vpop.f32.mrb[57].mxu0 }
 0x247   :  { %v2029_v30 = vpop.f32.mrb[58].mxu0 }
 0x248   :  { %v2828_v62 = vpop.f32.mrb[59].mxu0 }
 0x24d   :  { %v2034_v4 = vpop.f32.mrb[60].mxu0 }
 0x24e   :  { %v2831_v53 = vpop.f32.mrb[61].mxu0 }
 0x24f   :  { %v2037_v47 = vpop.f32.mrb[62].mxu0 }
 0x250   :  { %v2832_v60 = vpop.f32.mrb[63].mxu0 }
 0x256   :  { %v3975_v18 = vpop.f32.mrb[64].mxu0 }
 0x257   :  { %v2835_v49 = vpop.f32.mrb[65].mxu0 }
 0x258   :  { %v3977_v5 = vpop.f32.mrb[66].mxu0 }
 0x259   :  { %v2836_v38 = vpop.f32.mrb[67].mxu0 }
 0x25d   :  { %v2638_v44 = vpop.f32.mrb[104].mxu1 }
 0x25e   :  { %v2639_v52 = vpop.f32.mrb[105].mxu1  ;;  %v3984_v7 = vpop.f32.mrb[68].mxu0 }
 0x25f   :  { %v2640_v8 = vadd.f32 %v2639_v52, %v2638_v44  ;;  %v2641_v36 = vpop.f32.mrb[106].mxu1  ;;  %v2839_v10 = vpop.f32.mrb[69].mxu0 }
 0x260   :  { %v2642_v37 = vpop.f32.mrb[107].mxu1  ;;  %v3987_v25 = vpop.f32.mrb[70].mxu0 }
 0x261   :  { %v1883_v6 = vadd.f32 %v2640_v8, %v3982_v54  ;;  %v2643_v57 = vadd.f32 %v2642_v37, %v2641_v36  ;;  %v2840_v12 = vpop.f32.mrb[71].mxu0 }
 0x263   :  { %v2019_v0 = vadd.f32 %v2018_v56, %v1883_v6  ;;  %v1886_v15 = vadd.f32 %v2643_v57, %v3982_v54 }
 0x265   :  { %v2022_v16 = vadd.f32 %v2021_v55, %v1886_v15  ;;  %v2644_v28 = vpop.f32.mrb[108].mxu1 }
 0x266   :  { %v2645_v19 = vpop.f32.mrb[109].mxu1  ;;  %v3990_v9 = vpop.f32.mrb[72].mxu0 }
 0x267   :  { %v2439_v21 = vpack.c.bf16 %v2022_v16, %v2019_v0  ;;  %v2646_v22 = vadd.f32 %v2645_v19, %v2644_v28  ;;  %v2647_v11 = vpop.f32.mrb[110].mxu1  ;;  %v2843_v23 = vpop.f32.mrb[73].mxu0 }
 0x268   :  { %v2648_v24 = vpop.f32.mrb[111].mxu1  ;;  %v3996_v43 = vpop.f32.mrb[74].mxu0 }
 0x269   :  { %2440 = vst [vmem:[%s4083_s6] sm:$0xff] %v2439_v21   ;;  %v1891_v41 = vadd.f32 %v2646_v22, %v3982_v54  ;;  %v2649_v59 = vadd.f32 %v2648_v24, %v2647_v11  ;;  %v2844_v2 = vpop.f32.mrb[75].mxu0 }
 0x26b   :  { %v2027_v27 = vadd.f32 %v2026_v20, %v1891_v41  ;;  %v1894_v32 = vadd.f32 %v2649_v59, %v3982_v54 }
 0x26d   :  { %v2030_v26 = vadd.f32 %v2029_v30, %v1894_v32  ;;  %v2650_v33 = vpop.f32.mrb[112].mxu1 }
 0x26e   :  { %v2651_v61 = vpop.f32.mrb[113].mxu1  ;;  %v3999_v34 = vpop.f32.mrb[76].mxu0 }
 0x26f   :  { %v2444_v39 = vpack.c.bf16 %v2030_v26, %v2027_v27  ;;  %v2652_v40 = vadd.f32 %v2651_v61, %v2650_v33  ;;  %v2653_v42 = vpop.f32.mrb[114].mxu1  ;;  %v2847_v17 = vpop.f32.mrb[77].mxu0 }
 0x270   :  { %v2654_v50 = vpop.f32.mrb[115].mxu1  ;;  %v4005_v45 = vpop.f32.mrb[78].mxu0 }
 0x271   :  { %2496 = vst [vmem:[%s4083_s6 + $0x8] sm:$0xff] %v2444_v39   ;;  %v1899_v1 = vadd.f32 %v2652_v40, %v3982_v54  ;;  %v2655_v51 = vadd.f32 %v2654_v50, %v2653_v42  ;;  %v2848_v13 = vpop.f32.mrb[79].mxu0 }
 0x273   :  { %v2035_v46 = vadd.f32 %v2034_v4, %v1899_v1  ;;  %v1902_v48 = vadd.f32 %v2655_v51, %v3982_v54 }
 0x275   :  { %v2038_v29 = vadd.f32 %v2037_v47, %v1902_v48  ;;  %v2656_v14 = vpop.f32.mrb[116].mxu1 }
 0x276   :  { %v2657_v31 = vpop.f32.mrb[117].mxu1  ;;  %v4008_v56 = vpop.f32.mrb[80].mxu0 }
 0x277   :  { %v2449_v35 = vpack.c.bf16 %v2038_v29, %v2035_v46  ;;  %v2658_v3 = vadd.f32 %v2657_v31, %v2656_v14  ;;  %v2659_v55 = vpop.f32.mrb[118].mxu1  ;;  %v2851_v63 = vpop.f32.mrb[81].mxu0 }
 0x278   :  { %v2660_v20 = vpop.f32.mrb[119].mxu1  ;;  %v4014_v30 = vpop.f32.mrb[82].mxu0 }
 0x279   :  { %2497 = vst [vmem:[%s4083_s6 + $0x10] sm:$0xff] %v2449_v35   ;;  %v1907_v58 = vadd.f32 %v2658_v3, %v3982_v54  ;;  %v2661_v62 = vadd.f32 %v2660_v20, %v2659_v55  ;;  %v2852_v4 = vpop.f32.mrb[83].mxu0 }
 0x27b   :  { %v2043_v53 = vadd.f32 %v3975_v18, %v1907_v58  ;;  %v1910_v47 = vadd.f32 %v2661_v62, %v3982_v54 }
 0x27d   :  { %v2046_v60 = vadd.f32 %v3977_v5, %v1910_v47  ;;  %v2662_v49 = vpop.f32.mrb[120].mxu1 }
 0x27e   :  { %v2663_v38 = vpop.f32.mrb[121].mxu1  ;;  %v4019_v52 = vpop.f32.mrb[84].mxu0 }
 0x27f   :  { %v2454_v44 = vpack.c.bf16 %v2046_v60, %v2043_v53  ;;  %v2664_v8 = vadd.f32 %v2663_v38, %v2662_v49  ;;  %v2665_v36 = vpop.f32.mrb[122].mxu1  ;;  %v2855_v10 = vpop.f32.mrb[85].mxu0 }
 0x280   :  { %v2666_v37 = vpop.f32.mrb[123].mxu1  ;;  %v2085_v18 = vpop.f32.mrb[86].mxu0 }
 0x281   :  { %2498 = vst [vmem:[%s4083_s6 + $0x18] sm:$0xff] %v2454_v44   ;;  %v1915_v6 = vadd.f32 %v2664_v8, %v3982_v54  ;;  %v2667_v57 = vadd.f32 %v2666_v37, %v2665_v36  ;;  %v2856_v12 = vpop.f32.mrb[87].mxu0 }
 0x283   :  { %v2051_v5 = vadd.f32 %v3984_v7, %v1915_v6  ;;  %v1918_v0 = vadd.f32 %v2667_v57, %v3982_v54 }
 0x285   :  { %v2054_v15 = vadd.f32 %v3987_v25, %v1918_v0  ;;  %v2668_v16 = vpop.f32.mrb[124].mxu1 }
 0x286   :  { %v2669_v28 = vpop.f32.mrb[125].mxu1  ;;  %v2090_v21 = vpop.f32.mrb[88].mxu0 }
 0x287   :  { %v2459_v19 = vpack.c.bf16 %v2054_v15, %v2051_v5  ;;  %v2670_v22 = vadd.f32 %v2669_v28, %v2668_v16  ;;  %v2671_v11 = vpop.f32.mrb[126].mxu1  ;;  %v2859_v23 = vpop.f32.mrb[89].mxu0 }
 0x288   :  { %v2672_v24 = vpop.f32.mrb[127].mxu1  ;;  %v2093_v59 = vpop.f32.mrb[90].mxu0 }
 0x289   :  { %2499 = vst [vmem:[%s4083_s6 + $0x20] sm:$0xff] %v2459_v19   ;;  %v1923_v41 = vadd.f32 %v2670_v22, %v3982_v54  ;;  %v2673_v7 = vadd.f32 %v2672_v24, %v2671_v11  ;;  %v2860_v2 = vpop.f32.mrb[91].mxu0 }
 0x28b   :  { %v2059_v27 = vadd.f32 %v3990_v9, %v1923_v41  ;;  %v1926_v25 = vadd.f32 %v2673_v7, %v3982_v54 }
 0x28d   :  { %v2062_v32 = vadd.f32 %v3996_v43, %v1926_v25  ;;  %v2674_v26 = vpop.f32.mrb[128].mxu1 }
 0x28e   :  { %v2675_v33 = vpop.f32.mrb[129].mxu1  ;;  %v2098_v39 = vpop.f32.mrb[92].mxu0 }
 0x28f   :  { %v2464_v61 = vpack.c.bf16 %v2062_v32, %v2059_v27  ;;  %v2676_v40 = vadd.f32 %v2675_v33, %v2674_v26  ;;  %v2677_v42 = vpop.f32.mrb[130].mxu1  ;;  %v2863_v17 = vpop.f32.mrb[93].mxu0 }
 0x290   :  { %v2678_v50 = vpop.f32.mrb[131].mxu1  ;;  %v2101_v51 = vpop.f32.mrb[94].mxu0 }
 0x291   :  { %2500 = vst [vmem:[%s4083_s6 + $0x28] sm:$0xff] %v2464_v61   ;;  %v1931_v1 = vadd.f32 %v2676_v40, %v3982_v54  ;;  %v2679_v9 = vadd.f32 %v2678_v50, %v2677_v42  ;;  %v2864_v13 = vpop.f32.mrb[95].mxu0 }
 0x293   :  { %v2067_v46 = vadd.f32 %v3999_v34, %v1931_v1  ;;  %v1934_v43 = vadd.f32 %v2679_v9, %v3982_v54 }
 0x295   :  { %v2070_v48 = vadd.f32 %v4005_v45, %v1934_v43  ;;  %v2680_v29 = vpop.f32.mrb[132].mxu1 }
 0x296   :  { %v2681_v14 = vpop.f32.mrb[133].mxu1 }
 0x297   :  { %v2469_v31 = vpack.c.bf16 %v2070_v48, %v2067_v46  ;;  %v2682_v35 = vadd.f32 %v2681_v14, %v2680_v29  ;;  %v2683_v3 = vpop.f32.mrb[134].mxu1 }
 0x298   :  { %v2684_v55 = vpop.f32.mrb[135].mxu1 }
 0x299   :  { %2501 = vst [vmem:[%s4083_s6 + $0x30] sm:$0xff] %v2469_v31   ;;  %v1939_v63 = vadd.f32 %v2682_v35, %v3982_v54  ;;  %v2685_v20 = vadd.f32 %v2684_v55, %v2683_v3 }
 0x29b   :  { %v2075_v58 = vadd.f32 %v4008_v56, %v1939_v63  ;;  %v1942_v34 = vadd.f32 %v2685_v20, %v3982_v54 }
 0x29d   :  { %v2078_v62 = vadd.f32 %v4014_v30, %v1942_v34  ;;  %v2686_v45 = vpop.f32.mrb[136].mxu1 }
 0x29e   :  { %v2687_v4 = vpop.f32.mrb[137].mxu1 }
 0x29f   :  { %v2474_v53 = vpack.c.bf16 %v2078_v62, %v2075_v58  ;;  %v2688_v47 = vadd.f32 %v2687_v4, %v2686_v45  ;;  %v2689_v60 = vpop.f32.mrb[138].mxu1 }
 0x2a0   :  { %v2690_v49 = vpop.f32.mrb[139].mxu1 }
 0x2a1   :  { %2502 = vst [vmem:[%s4083_s6 + $0x38] sm:$0xff] %v2474_v53   ;;  %v1947_v38 = vadd.f32 %v2688_v47, %v3982_v54  ;;  %v2691_v44 = vadd.f32 %v2690_v49, %v2689_v60 }
 0x2a3   :  { %v2083_v8 = vadd.f32 %v4019_v52, %v1947_v38  ;;  %v1950_v56 = vadd.f32 %v2691_v44, %v3982_v54 }
 0x2a5   :  { %v2086_v36 = vadd.f32 %v2085_v18, %v1950_v56  ;;  %v2692_v10 = vpop.f32.mrb[140].mxu1 }
 0x2a6   :  { %v2693_v30 = vpop.f32.mrb[141].mxu1 }
 0x2a7   :  { %v2479_v37 = vpack.c.bf16 %v2086_v36, %v2083_v8  ;;  %v2694_v6 = vadd.f32 %v2693_v30, %v2692_v10  ;;  %v2695_v57 = vpop.f32.mrb[142].mxu1 }
 0x2a8   :  { %v2696_v12 = vpop.f32.mrb[143].mxu1 }
 0x2a9   :  { %2503 = vst [vmem:[%s4083_s6 + $0x40] sm:$0xff] %v2479_v37   ;;  %v1955_v5 = vadd.f32 %v2694_v6, %v3982_v54  ;;  %v2697_v0 = vadd.f32 %v2696_v12, %v2695_v57 }
 0x2ab   :  { %v2091_v15 = vadd.f32 %v2090_v21, %v1955_v5  ;;  %v1958_v16 = vadd.f32 %v2697_v0, %v3982_v54 }
 0x2ad   :  { %v2094_v52 = vadd.f32 %v2093_v59, %v1958_v16  ;;  %v2698_v28 = vpop.f32.mrb[144].mxu1 }
 0x2ae   :  { %v2699_v19 = vpop.f32.mrb[145].mxu1 }
 0x2af   :  { %v2484_v18 = vpack.c.bf16 %v2094_v52, %v2091_v15  ;;  %v2700_v22 = vadd.f32 %v2699_v19, %v2698_v28  ;;  %v2701_v11 = vpop.f32.mrb[146].mxu1 }
 0x2b0   :  { %v2702_v23 = vpop.f32.mrb[147].mxu1 }
 0x2b1   :  { %2504 = vst [vmem:[%s4083_s6 + $0x48] sm:$0xff] %v2484_v18   ;;  %v1963_v24 = vadd.f32 %v2700_v22, %v3982_v54  ;;  %v2703_v41 = vadd.f32 %v2702_v23, %v2701_v11 }
 0x2b3   :  { %v2099_v7 = vadd.f32 %v2098_v39, %v1963_v24  ;;  %v1966_v2 = vadd.f32 %v2703_v41, %v3982_v54 }
 0x2b5   :  { %v2102_v21 = vadd.f32 %v2101_v51, %v1966_v2  ;;  %v2704_v27 = vpop.f32.mrb[148].mxu1 }
 0x2b6   :  { %v2705_v25 = vpop.f32.mrb[149].mxu1 }
 0x2b7   :  { %v2489_v59 = vpack.c.bf16 %v2102_v21, %v2099_v7  ;;  %v2706_v32 = vadd.f32 %v2705_v25, %v2704_v27  ;;  %v2707_v26 = vpop.f32.mrb[150].mxu1 }
 0x2b8   :  { %v2708_v33 = vpop.f32.mrb[151].mxu1 }
 0x2b9   :  { %2505 = vst [vmem:[%s4083_s6 + $0x50] sm:$0xff] %v2489_v59   ;;  %v2709_v61 = vadd.f32 %v2708_v33, %v2707_v26  ;;  %v1971_v39 = vadd.f32 %v2706_v32, %v3982_v54 }
 0x2bb   :  { %v1974_v46 = vadd.f32 %v2709_v61, %v3982_v54 }
 0x2bd   :  { %v2710_v40 = vpop.f32.mrb[152].mxu1 }
 0x2be   :  { %v2711_v42 = vpop.f32.mrb[153].mxu1 }
 0x2bf   :  { %v2712_v17 = vadd.f32 %v2711_v42, %v2710_v40  ;;  %v2713_v50 = vpop.f32.mrb[154].mxu1 }
 0x2c0   :  { %v2714_v1 = vpop.f32.mrb[155].mxu1 }
 0x2c1   :  { %v1979_v31 = vadd.f32 %v2712_v17, %v3982_v54 }
 0x2c5   :  { %v2106_v9 = vpop.f32.mrb[156].mxu1 }
 0x2c6   :  { %v2107_v51 = vadd.f32 %v2106_v9, %v1971_v39  ;;  %v2867_v13 = vpop.f32.mrb[157].mxu1 }
 0x2c7   :  { %v2109_v43 = vpop.f32.mrb[158].mxu1 }
 0x2c8   :  { %v2110_v48 = vadd.f32 %v2109_v43, %v1974_v46  ;;  %v2868_v29 = vpop.f32.mrb[159].mxu1 }
 0x2ca   :  { %v2494_v14 = vpack.c.bf16 %v2110_v48, %v2107_v51 }
 0x2cc   :  { %2506 = vst [vmem:[%s4083_s6 + $0x58] sm:$0xff] %v2494_v14  }
 0x2cd   :  { %v2114_v35 = vpop.f32.mrb[160].mxu1 }
 0x2ce   :  { %v2115_v3 = vadd.f32 %v2114_v35, %v1979_v31  ;;  %v2871_v55 = vpop.f32.mrb[161].mxu1 }
 0x2cf   :  { %v2117_v63 = vpop.f32.mrb[162].mxu1 }
 0x2d0   :  { %v2435_v20 = vpack.c.bf16 %v2115_v3, %v2115_v3  ;;  %v2872_v58 = vpop.f32.mrb[163].mxu1 }
 0x2d2   :  { %2245 = vst [vmem:[%s4083_s6 + $0x60] sm:$0xf] %v2435_v20 }

</bundles_post_ra>
